<compile_context>
chip_gen: v5e
topology: v5e:2x2
jax: 0.10.0
libtpu: 0.0.40
codegen_flags: <defaults>
</compile_context>

<pallas_src>
import functools

import jax
import jax.numpy as jnp
from jax.experimental import pallas as pl
from jax.experimental.pallas import tpu as pltpu

NEG = -1e30                # finite stand-in for log(0): avoids inf-inf NaNs on the VPU
ZERO_INF_THRESH = -1e25    # below this => treat CTC loss as infinite (zero_infinity=True -> 0)
                           # NOTE: threshold is tied to NEG; change them together.
LANES = 128                # alpha / emissions live on the 128-lane axis (needs 2*Smax+1 <= 128)
G = 8                      # samples per grid step = sublanes of one f32 vreg


def _forward_sum_kernel(text_lens_ref, mel_lens_ref,   # scalar prefetch (SMEM)
                        attn_ref,                       # (Tmax, G, Smax) VMEM block, time-major
                        onehot_ref,                     # (Smax, 128) constant, VMEM-resident
                        out_ref,                        # (G, 128) per-sample loss (lane-broadcast)
                        e_ref,                          # (Tmax, G, 128) VMEM scratch: emissions
                        alpha_ref,                      # (G, 128)       VMEM scratch: log-alpha
                        *, blank_logprob):
    Tmax, g_blk, Smax = attn_ref.shape
    L = out_ref.shape[1]
    base = pl.program_id(0) * g_blk

    # ---- per-sample lengths: SMEM scalars -> one sublane each of (G, 1) vectors ----------
    row = jax.lax.broadcasted_iota(jnp.int32, (g_blk, 1), 0)
    s_col = jnp.zeros((g_blk, 1), jnp.int32)     # text length per sample
    t_col = jnp.zeros((g_blk, 1), jnp.int32)     # mel length per sample (clamped to Tmax)
    t_dyn = jnp.int32(1)                         # dynamic recursion trip count for this block
    for g in range(g_blk):                       # g_blk == 8, done once per block: cheap
        s_g = text_lens_ref[base + g]
        t_g = jnp.minimum(mel_lens_ref[base + g], Tmax)
        s_col = jnp.where(row == g, s_g, s_col)
        t_col = jnp.where(row == g, t_g, t_col)
        t_dyn = jnp.maximum(t_dyn, t_g)

    # ---- 1) blank-padded log-softmax over the text axis (torch dim=3), blank analytic ----
    attn = attn_ref[...]                                             # (Tmax, G, Smax) f32
    col = jax.lax.broadcasted_iota(jnp.int32, (1, g_blk, Smax), 2)
    col_valid = col < s_col.reshape(1, g_blk, 1)                     # text tokens 0..S-1 valid
    masked = jnp.where(col_valid, attn, NEG)
    mrow = jnp.max(masked, axis=2, keepdims=True)                    # (Tmax, G, 1)
    lse_attn = mrow + jnp.log(jnp.sum(jnp.exp(masked - mrow), axis=2, keepdims=True))
    m2 = jnp.maximum(lse_attn, blank_logprob)                        # logaddexp with blank const
    lse_tot = m2 + jnp.log(jnp.exp(lse_attn - m2) + jnp.exp(blank_logprob - m2))
    lp = masked - lse_tot                                            # log-softmax, text classes
    blank_lp = blank_logprob - lse_tot                               # log-softmax, blank class

    # ---- 2) emission E[t, g, s]: odd lanes pick text token (s-1)//2, even lanes = blank ---
    lane = jax.lax.broadcasted_iota(jnp.int32, (1, L), 1)
    odd = (lane % 2) == 1
    mat = jnp.dot(lp.reshape(Tmax * g_blk, Smax), onehot_ref[...],
                  preferred_element_type=jnp.float32)                # (Tmax*G, 128)
    e2 = jnp.where(odd, mat, blank_lp.reshape(Tmax * g_blk, 1))
    e_ref[...] = e2.reshape(Tmax, g_blk, L)

    # ---- 3) CTC forward recursion: one sample per sublane, alpha = one (8, 128) vreg ------
    two_s = 2 * s_col                                                # (G, 1)
    valid = lane <= two_s                                            # (G, 128)
    e0 = e_ref[0]
    alpha_ref[...] = jnp.where((lane <= 1) & valid, e0, NEG)

    # pltpu.roll follows jnp.roll semantics: result[:, l] = x[:, l - shift]; low lanes that
    # would wrap around are forced back to NEG with the lane iota.
    @pl.loop(1, t_dyn)
    def _(t):
        alpha = alpha_ref[...]
        e_t = e_ref[t]
        sh1 = jnp.where(lane >= 1, pltpu.roll(alpha, 1, axis=1), NEG)
        sh2 = jnp.where(odd & (lane >= 2), pltpu.roll(alpha, 2, axis=1), NEG)
        mx = jnp.maximum(jnp.maximum(alpha, sh1), sh2)
        ssum = jnp.exp(alpha - mx) + jnp.exp(sh1 - mx) + jnp.exp(sh2 - mx)   # 3 exp + 1 log / step
        new = jnp.where(valid, e_t + mx + jnp.log(ssum), NEG)
        alpha_ref[...] = jnp.where(t < t_col, new, alpha)            # freeze past each mel_len

    # ---- 4) loss_b = -logsumexp(alpha[2S], alpha[2S-1]) / S  (CTCLoss 'mean', N=1) --------
    alpha = alpha_ref[...]
    fin = (lane == two_s) | (lane == two_s - 1)
    vals = jnp.where(fin, alpha, NEG)
    mv = jnp.max(vals, axis=1, keepdims=True)
    total = mv + jnp.log(jnp.sum(jnp.exp(vals - mv), axis=1, keepdims=True))  # (G, 1)
    s_f = jnp.maximum(s_col, 1).astype(jnp.float32)
    loss = jnp.where(total < ZERO_INF_THRESH, 0.0, -total / s_f)     # emulate zero_infinity=True
    out_ref[...] = jnp.broadcast_to(loss, (g_blk, L))


def forward_sum_loss(attn_logprob, text_lens, mel_lens, blank_logprob=-1.0):
    """attn_logprob: (B, 1, Tmel_max, Stext_max); text_lens / mel_lens: (B,) ints."""
    B, _, Tmax, Smax = attn_logprob.shape
    assert 2 * Smax + 1 <= LANES, "text axis too long for single-vreg alpha buffer"

    # pad batch up to a multiple of G (padded samples: len 1, ignored in the final mean)
    B_pad = ((B + G - 1) // G) * G
    pad_n = B_pad - B
    attn = attn_logprob[:, 0, :, :].astype(jnp.float32)
    if pad_n:
        attn = jnp.pad(attn, ((0, pad_n), (0, 0), (0, 0)))
    attn_t = jnp.transpose(attn, (1, 0, 2))                          # (Tmax, B_pad, Smax)

    tl = jnp.pad(jnp.asarray(text_lens, jnp.int32), (0, pad_n), constant_values=1)
    ml = jnp.pad(jnp.asarray(mel_lens, jnp.int32), (0, pad_n), constant_values=1)

    # constant "label gather" matrix: onehot[j, s] = 1 iff lane s is odd and its CTC label
    # is text token j (extended sequence blank,y1,blank,...,yS,blank with y = 1..S).
    s_idx = jnp.arange(LANES)[None, :]
    j_idx = jnp.arange(Smax)[:, None]
    onehot = (((s_idx % 2) == 1) & (((s_idx - 1) // 2) == j_idx)).astype(jnp.float32)

    kernel = functools.partial(_forward_sum_kernel, blank_logprob=float(blank_logprob))

    # VMEM budget: e_ref is Tmax * 4 KiB; for very long Tmax (>~4k frames on v7x's 64 MiB
    # VMEM) split Tmax into chunks or raise vmem_limit_bytes in CompilerParams.
    per_sample = pl.pallas_call(
        kernel,
        out_shape=jax.ShapeDtypeStruct((B_pad, LANES), jnp.float32),
        grid_spec=pltpu.PrefetchScalarGridSpec(
            num_scalar_prefetch=2,
            grid=(B_pad // G,),
            in_specs=[
                pl.BlockSpec((Tmax, G, Smax), lambda blk, tl_r, ml_r: (0, blk, 0)),
                pl.BlockSpec((Smax, LANES), lambda blk, tl_r, ml_r: (0, 0)),
            ],
            out_specs=pl.BlockSpec((G, LANES), lambda blk, tl_r, ml_r: (blk, 0)),
            scratch_shapes=[
                pltpu.VMEM((Tmax, G, LANES), jnp.float32),   # emissions
                pltpu.VMEM((G, LANES), jnp.float32),         # log-alpha
            ],
        ),
        compiler_params=pltpu.CompilerParams(dimension_semantics=("parallel",)),
    )(tl, ml, attn_t, onehot)

    # per_sample[b, 0] = CTC loss for sample b (already divided by its text_len)
    return jnp.mean(per_sample[:B, 0])


if __name__ == "__main__":
    key = jax.random.PRNGKey(0)
    B, Tmel, Stext = 2, 16, 8
    attn_logprob = jax.random.normal(key, (B, 1, Tmel, Stext), dtype=jnp.float32)
    text_lens = jnp.array([8, 5], dtype=jnp.int32)
    mel_lens = jnp.array([16, 12], dtype=jnp.int32)

    loss = forward_sum_loss(attn_logprob, text_lens, mel_lens, blank_logprob=-1.0)
    jax.block_until_ready(loss)
    print("KERNEL_OK")
</pallas_src>

<mosaic_0001>
module attributes {stable_mosaic.version = 11 : i64} {
  func.func @_forward_sum_kernel(%arg0: i32, %arg1: memref<8xi32, #tpu.memory_space<smem>>, %arg2: memref<8xi32, #tpu.memory_space<smem>>, %arg3: memref<16x8x8xf32, #tpu.memory_space<vmem>>, %arg4: memref<8x128xf32, #tpu.memory_space<vmem>>, %arg5: memref<8x128xf32, #tpu.memory_space<vmem>>, %arg6: memref<16x8x128xf32, #tpu.memory_space<vmem>>, %arg7: memref<8x128xf32, #tpu.memory_space<vmem>>) attributes {dimension_semantics = [#tpu.dimension_semantics<parallel>], iteration_bounds = array<i64: 1>, scalar_prefetch = 2 : i64, scratch_operands = 2 : i64, tpu.core_type = #tpu.core_type<tc>, window_params = [{transform_indices = @transform_0, window_bounds = array<i64: 16, 8, 8>}, {pipeline_mode = #tpu.pipeline_mode<synchronous>, transform_indices = @transform_1, window_bounds = array<i64: 8, 128>}, {transform_indices = @transform_2, window_bounds = array<i64: 8, 128>}]} {
    %c8_i32 = arith.constant 8 : i32
    %0 = arith.muli %arg0, %c8_i32 : i32
    %1 = tpu.iota {dimensions = array<i32: 0>} : vector<8x1xi32>
    %c0_i32 = arith.constant 0 : i32
    %2 = vector.broadcast %c0_i32 : i32 to vector<8x1xi32>
    %c0_i32_0 = arith.constant 0 : i32
    %3 = vector.broadcast %c0_i32_0 : i32 to vector<8x1xi32>
    %c0_i32_1 = arith.constant 0 : i32
    %4 = arith.addi %0, %c0_i32_1 : i32
    %5 = arith.index_cast %4 : i32 to index
    %6 = memref.load %arg1[%5] : memref<8xi32, #tpu.memory_space<smem>>
    %c0_i32_2 = arith.constant 0 : i32
    %7 = arith.addi %0, %c0_i32_2 : i32
    %8 = arith.index_cast %7 : i32 to index
    %9 = memref.load %arg2[%8] : memref<8xi32, #tpu.memory_space<smem>>
    %c16_i32 = arith.constant 16 : i32
    %10 = arith.minsi %9, %c16_i32 : i32
    %c0_i32_3 = arith.constant 0 : i32
    %11 = vector.broadcast %c0_i32_3 : i32 to vector<8x1xi32>
    %12 = arith.cmpi eq, %1, %11 : vector<8x1xi32>
    %13 = vector.broadcast %6 : i32 to vector<8x1xi32>
    %14 = arith.select %12, %13, %2 : vector<8x1xi1>, vector<8x1xi32>
    %c0_i32_4 = arith.constant 0 : i32
    %15 = vector.broadcast %c0_i32_4 : i32 to vector<8x1xi32>
    %16 = arith.cmpi eq, %1, %15 : vector<8x1xi32>
    %17 = vector.broadcast %10 : i32 to vector<8x1xi32>
    %18 = arith.select %16, %17, %3 : vector<8x1xi1>, vector<8x1xi32>
    %c1_i32 = arith.constant 1 : i32
    %19 = arith.maxsi %c1_i32, %10 : i32
    %c1_i32_5 = arith.constant 1 : i32
    %20 = arith.addi %0, %c1_i32_5 : i32
    %21 = arith.index_cast %20 : i32 to index
    %22 = memref.load %arg1[%21] : memref<8xi32, #tpu.memory_space<smem>>
    %c1_i32_6 = arith.constant 1 : i32
    %23 = arith.addi %0, %c1_i32_6 : i32
    %24 = arith.index_cast %23 : i32 to index
    %25 = memref.load %arg2[%24] : memref<8xi32, #tpu.memory_space<smem>>
    %c16_i32_7 = arith.constant 16 : i32
    %26 = arith.minsi %25, %c16_i32_7 : i32
    %c1_i32_8 = arith.constant 1 : i32
    %27 = vector.broadcast %c1_i32_8 : i32 to vector<8x1xi32>
    %28 = arith.cmpi eq, %1, %27 : vector<8x1xi32>
    %29 = vector.broadcast %22 : i32 to vector<8x1xi32>
    %30 = arith.select %28, %29, %14 : vector<8x1xi1>, vector<8x1xi32>
    %c1_i32_9 = arith.constant 1 : i32
    %31 = vector.broadcast %c1_i32_9 : i32 to vector<8x1xi32>
    %32 = arith.cmpi eq, %1, %31 : vector<8x1xi32>
    %33 = vector.broadcast %26 : i32 to vector<8x1xi32>
    %34 = arith.select %32, %33, %18 : vector<8x1xi1>, vector<8x1xi32>
    %35 = arith.maxsi %19, %26 : i32
    %c2_i32 = arith.constant 2 : i32
    %36 = arith.addi %0, %c2_i32 : i32
    %37 = arith.index_cast %36 : i32 to index
    %38 = memref.load %arg1[%37] : memref<8xi32, #tpu.memory_space<smem>>
    %c2_i32_10 = arith.constant 2 : i32
    %39 = arith.addi %0, %c2_i32_10 : i32
    %40 = arith.index_cast %39 : i32 to index
    %41 = memref.load %arg2[%40] : memref<8xi32, #tpu.memory_space<smem>>
    %c16_i32_11 = arith.constant 16 : i32
    %42 = arith.minsi %41, %c16_i32_11 : i32
    %c2_i32_12 = arith.constant 2 : i32
    %43 = vector.broadcast %c2_i32_12 : i32 to vector<8x1xi32>
    %44 = arith.cmpi eq, %1, %43 : vector<8x1xi32>
    %45 = vector.broadcast %38 : i32 to vector<8x1xi32>
    %46 = arith.select %44, %45, %30 : vector<8x1xi1>, vector<8x1xi32>
    %c2_i32_13 = arith.constant 2 : i32
    %47 = vector.broadcast %c2_i32_13 : i32 to vector<8x1xi32>
    %48 = arith.cmpi eq, %1, %47 : vector<8x1xi32>
    %49 = vector.broadcast %42 : i32 to vector<8x1xi32>
    %50 = arith.select %48, %49, %34 : vector<8x1xi1>, vector<8x1xi32>
    %51 = arith.maxsi %35, %42 : i32
    %c3_i32 = arith.constant 3 : i32
    %52 = arith.addi %0, %c3_i32 : i32
    %53 = arith.index_cast %52 : i32 to index
    %54 = memref.load %arg1[%53] : memref<8xi32, #tpu.memory_space<smem>>
    %c3_i32_14 = arith.constant 3 : i32
    %55 = arith.addi %0, %c3_i32_14 : i32
    %56 = arith.index_cast %55 : i32 to index
    %57 = memref.load %arg2[%56] : memref<8xi32, #tpu.memory_space<smem>>
    %c16_i32_15 = arith.constant 16 : i32
    %58 = arith.minsi %57, %c16_i32_15 : i32
    %c3_i32_16 = arith.constant 3 : i32
    %59 = vector.broadcast %c3_i32_16 : i32 to vector<8x1xi32>
    %60 = arith.cmpi eq, %1, %59 : vector<8x1xi32>
    %61 = vector.broadcast %54 : i32 to vector<8x1xi32>
    %62 = arith.select %60, %61, %46 : vector<8x1xi1>, vector<8x1xi32>
    %c3_i32_17 = arith.constant 3 : i32
    %63 = vector.broadcast %c3_i32_17 : i32 to vector<8x1xi32>
    %64 = arith.cmpi eq, %1, %63 : vector<8x1xi32>
    %65 = vector.broadcast %58 : i32 to vector<8x1xi32>
    %66 = arith.select %64, %65, %50 : vector<8x1xi1>, vector<8x1xi32>
    %67 = arith.maxsi %51, %58 : i32
    %c4_i32 = arith.constant 4 : i32
    %68 = arith.addi %0, %c4_i32 : i32
    %69 = arith.index_cast %68 : i32 to index
    %70 = memref.load %arg1[%69] : memref<8xi32, #tpu.memory_space<smem>>
    %c4_i32_18 = arith.constant 4 : i32
    %71 = arith.addi %0, %c4_i32_18 : i32
    %72 = arith.index_cast %71 : i32 to index
    %73 = memref.load %arg2[%72] : memref<8xi32, #tpu.memory_space<smem>>
    %c16_i32_19 = arith.constant 16 : i32
    %74 = arith.minsi %73, %c16_i32_19 : i32
    %c4_i32_20 = arith.constant 4 : i32
    %75 = vector.broadcast %c4_i32_20 : i32 to vector<8x1xi32>
    %76 = arith.cmpi eq, %1, %75 : vector<8x1xi32>
    %77 = vector.broadcast %70 : i32 to vector<8x1xi32>
    %78 = arith.select %76, %77, %62 : vector<8x1xi1>, vector<8x1xi32>
    %c4_i32_21 = arith.constant 4 : i32
    %79 = vector.broadcast %c4_i32_21 : i32 to vector<8x1xi32>
    %80 = arith.cmpi eq, %1, %79 : vector<8x1xi32>
    %81 = vector.broadcast %74 : i32 to vector<8x1xi32>
    %82 = arith.select %80, %81, %66 : vector<8x1xi1>, vector<8x1xi32>
    %83 = arith.maxsi %67, %74 : i32
    %c5_i32 = arith.constant 5 : i32
    %84 = arith.addi %0, %c5_i32 : i32
    %85 = arith.index_cast %84 : i32 to index
    %86 = memref.load %arg1[%85] : memref<8xi32, #tpu.memory_space<smem>>
    %c5_i32_22 = arith.constant 5 : i32
    %87 = arith.addi %0, %c5_i32_22 : i32
    %88 = arith.index_cast %87 : i32 to index
    %89 = memref.load %arg2[%88] : memref<8xi32, #tpu.memory_space<smem>>
    %c16_i32_23 = arith.constant 16 : i32
    %90 = arith.minsi %89, %c16_i32_23 : i32
    %c5_i32_24 = arith.constant 5 : i32
    %91 = vector.broadcast %c5_i32_24 : i32 to vector<8x1xi32>
    %92 = arith.cmpi eq, %1, %91 : vector<8x1xi32>
    %93 = vector.broadcast %86 : i32 to vector<8x1xi32>
    %94 = arith.select %92, %93, %78 : vector<8x1xi1>, vector<8x1xi32>
    %c5_i32_25 = arith.constant 5 : i32
    %95 = vector.broadcast %c5_i32_25 : i32 to vector<8x1xi32>
    %96 = arith.cmpi eq, %1, %95 : vector<8x1xi32>
    %97 = vector.broadcast %90 : i32 to vector<8x1xi32>
    %98 = arith.select %96, %97, %82 : vector<8x1xi1>, vector<8x1xi32>
    %99 = arith.maxsi %83, %90 : i32
    %c6_i32 = arith.constant 6 : i32
    %100 = arith.addi %0, %c6_i32 : i32
    %101 = arith.index_cast %100 : i32 to index
    %102 = memref.load %arg1[%101] : memref<8xi32, #tpu.memory_space<smem>>
    %c6_i32_26 = arith.constant 6 : i32
    %103 = arith.addi %0, %c6_i32_26 : i32
    %104 = arith.index_cast %103 : i32 to index
    %105 = memref.load %arg2[%104] : memref<8xi32, #tpu.memory_space<smem>>
    %c16_i32_27 = arith.constant 16 : i32
    %106 = arith.minsi %105, %c16_i32_27 : i32
    %c6_i32_28 = arith.constant 6 : i32
    %107 = vector.broadcast %c6_i32_28 : i32 to vector<8x1xi32>
    %108 = arith.cmpi eq, %1, %107 : vector<8x1xi32>
    %109 = vector.broadcast %102 : i32 to vector<8x1xi32>
    %110 = arith.select %108, %109, %94 : vector<8x1xi1>, vector<8x1xi32>
    %c6_i32_29 = arith.constant 6 : i32
    %111 = vector.broadcast %c6_i32_29 : i32 to vector<8x1xi32>
    %112 = arith.cmpi eq, %1, %111 : vector<8x1xi32>
    %113 = vector.broadcast %106 : i32 to vector<8x1xi32>
    %114 = arith.select %112, %113, %98 : vector<8x1xi1>, vector<8x1xi32>
    %115 = arith.maxsi %99, %106 : i32
    %c7_i32 = arith.constant 7 : i32
    %116 = arith.addi %0, %c7_i32 : i32
    %117 = arith.index_cast %116 : i32 to index
    %118 = memref.load %arg1[%117] : memref<8xi32, #tpu.memory_space<smem>>
    %c7_i32_30 = arith.constant 7 : i32
    %119 = arith.addi %0, %c7_i32_30 : i32
    %120 = arith.index_cast %119 : i32 to index
    %121 = memref.load %arg2[%120] : memref<8xi32, #tpu.memory_space<smem>>
    %c16_i32_31 = arith.constant 16 : i32
    %122 = arith.minsi %121, %c16_i32_31 : i32
    %c7_i32_32 = arith.constant 7 : i32
    %123 = vector.broadcast %c7_i32_32 : i32 to vector<8x1xi32>
    %124 = arith.cmpi eq, %1, %123 : vector<8x1xi32>
    %125 = vector.broadcast %118 : i32 to vector<8x1xi32>
    %126 = arith.select %124, %125, %110 : vector<8x1xi1>, vector<8x1xi32>
    %c7_i32_33 = arith.constant 7 : i32
    %127 = vector.broadcast %c7_i32_33 : i32 to vector<8x1xi32>
    %128 = arith.cmpi eq, %1, %127 : vector<8x1xi32>
    %129 = vector.broadcast %122 : i32 to vector<8x1xi32>
    %130 = arith.select %128, %129, %114 : vector<8x1xi1>, vector<8x1xi32>
    %131 = arith.maxsi %115, %122 : i32
    %c0 = arith.constant 0 : index
    %c0_34 = arith.constant 0 : index
    %c0_35 = arith.constant 0 : index
    %132 = vector.load %arg3[%c0, %c0_34, %c0_35] : memref<16x8x8xf32, #tpu.memory_space<vmem>>, vector<16x8x8xf32>
    %133 = tpu.iota {dimensions = array<i32: 2>} : vector<1x8x8xi32>
    %134 = vector.shape_cast %126 : vector<8x1xi32> to vector<1x8x1xi32>
    %135 = vector.broadcast %134 : vector<1x8x1xi32> to vector<1x8x8xi32>
    %136 = arith.cmpi slt, %133, %135 : vector<1x8x8xi32>
    %cst = arith.constant -1.000000e+30 : f32
    %137 = vector.shape_cast %136 : vector<1x8x8xi1> to vector<1x8x8xi1>
    %138 = vector.broadcast %137 : vector<1x8x8xi1> to vector<16x8x8xi1>
    %139 = vector.broadcast %cst : f32 to vector<16x8x8xf32>
    %140 = arith.select %138, %132, %139 : vector<16x8x8xi1>, vector<16x8x8xf32>
    %cst_36 = arith.constant dense<0xFF800000> : vector<16x8xf32>
    %141 = vector.multi_reduction <maximumf>, %140, %cst_36 [2] : vector<16x8x8xf32> to vector<16x8xf32>
    %142 = vector.shape_cast %141 : vector<16x8xf32> to vector<16x8x1xf32>
    %143 = vector.broadcast %142 : vector<16x8x1xf32> to vector<16x8x8xf32>
    %144 = arith.subf %140, %143 : vector<16x8x8xf32>
    %145 = math.exp %144 : vector<16x8x8xf32>
    %cst_37 = arith.constant dense<0.000000e+00> : vector<16x8xf32>
    %146 = vector.multi_reduction <add>, %145, %cst_37 [2] : vector<16x8x8xf32> to vector<16x8xf32>
    %147 = vector.shape_cast %146 : vector<16x8xf32> to vector<16x8x1xf32>
    %148 = math.log %147 : vector<16x8x1xf32>
    %149 = arith.addf %142, %148 : vector<16x8x1xf32>
    %cst_38 = arith.constant -1.000000e+00 : f32
    %150 = vector.broadcast %cst_38 : f32 to vector<16x8x1xf32>
    %151 = arith.maximumf %149, %150 : vector<16x8x1xf32>
    %152 = arith.subf %149, %151 : vector<16x8x1xf32>
    %153 = math.exp %152 : vector<16x8x1xf32>
    %cst_39 = arith.constant -1.000000e+00 : f32
    %154 = vector.broadcast %cst_39 : f32 to vector<16x8x1xf32>
    %155 = arith.subf %154, %151 : vector<16x8x1xf32>
    %156 = math.exp %155 : vector<16x8x1xf32>
    %157 = arith.addf %153, %156 : vector<16x8x1xf32>
    %158 = math.log %157 : vector<16x8x1xf32>
    %159 = arith.addf %151, %158 : vector<16x8x1xf32>
    %160 = vector.broadcast %159 : vector<16x8x1xf32> to vector<16x8x8xf32>
    %161 = arith.subf %140, %160 : vector<16x8x8xf32>
    %cst_40 = arith.constant -1.000000e+00 : f32
    %162 = vector.broadcast %cst_40 : f32 to vector<16x8x1xf32>
    %163 = arith.subf %162, %159 : vector<16x8x1xf32>
    %164 = tpu.iota {dimensions = array<i32: 1>} : vector<1x128xi32>
    %c2_i32_41 = arith.constant 2 : i32
    %c0_i32_42 = arith.constant 0 : i32
    %165 = arith.cmpi eq, %c2_i32_41, %c0_i32_42 : i32
    %c1_i32_43 = arith.constant 1 : i32
    %166 = arith.select %165, %c1_i32_43, %c2_i32_41 : i32
    %167 = vector.broadcast %166 : i32 to vector<1x128xi32>
    %168 = arith.remsi %164, %167 : vector<1x128xi32>
    %c0_i32_44 = arith.constant 0 : i32
    %169 = vector.broadcast %c0_i32_44 : i32 to vector<1x128xi32>
    %170 = arith.cmpi ne, %168, %169 : vector<1x128xi32>
    %c0_i32_45 = arith.constant 0 : i32
    %171 = vector.broadcast %c0_i32_45 : i32 to vector<1x128xi32>
    %172 = arith.cmpi slt, %168, %171 : vector<1x128xi32>
    %c0_i32_46 = arith.constant 0 : i32
    %173 = arith.cmpi slt, %166, %c0_i32_46 : i32
    %174 = vector.broadcast %173 : i1 to vector<1x128xi1>
    %175 = vector.broadcast %174 : vector<1x128xi1> to vector<1x128xi1>
    %176 = arith.xori %172, %175 : vector<1x128xi1>
    %177 = arith.andi %176, %170 : vector<1x128xi1>
    %178 = vector.broadcast %166 : i32 to vector<1x128xi32>
    %179 = arith.addi %168, %178 : vector<1x128xi32>
    %180 = arith.select %177, %179, %168 : vector<1x128xi1>, vector<1x128xi32>
    %c1_i32_47 = arith.constant 1 : i32
    %181 = vector.broadcast %c1_i32_47 : i32 to vector<1x128xi32>
    %182 = arith.cmpi eq, %180, %181 : vector<1x128xi32>
    %183 = vector.shape_cast %161 : vector<16x8x8xf32> to vector<128x8xf32>
    %c0_48 = arith.constant 0 : index
    %c0_49 = arith.constant 0 : index
    %184 = vector.load %arg4[%c0_48, %c0_49] : memref<8x128xf32, #tpu.memory_space<vmem>>, vector<8x128xf32>
    %cst_50 = arith.constant dense<0.000000e+00> : vector<128x128xf32>
    %185 = tpu.matmul %183, %184, %cst_50 {dimension_numbers = #tpu.dot_dimension_numbers<[1], [0], [0], [1], [0, 0, 1, 1], [], []>} : vector<128x8xf32>, vector<8x128xf32>, vector<128x128xf32> -> vector<128x128xf32>
    %186 = vector.shape_cast %163 : vector<16x8x1xf32> to vector<128x1xf32>
    %187 = vector.shape_cast %182 : vector<1x128xi1> to vector<1x128xi1>
    %188 = vector.broadcast %187 : vector<1x128xi1> to vector<128x128xi1>
    %189 = vector.shape_cast %186 : vector<128x1xf32> to vector<128x1xf32>
    %190 = vector.broadcast %189 : vector<128x1xf32> to vector<128x128xf32>
    %191 = arith.select %188, %185, %190 : vector<128x128xi1>, vector<128x128xf32>
    %192 = vector.shape_cast %191 : vector<128x128xf32> to vector<16x8x128xf32>
    %c0_51 = arith.constant 0 : index
    %c0_52 = arith.constant 0 : index
    %c0_53 = arith.constant 0 : index
    %193 = vector.load %arg6[%c0_51, %c0_52, %c0_53] : memref<16x8x128xf32, #tpu.memory_space<vmem>>, vector<16x8x128xf32>
    tpu.vector_store %arg6[%c0_51, %c0_52, %c0_53], %192 {strides = array<i32>} : memref<16x8x128xf32, #tpu.memory_space<vmem>>, vector<16x8x128xf32>,
    %c2_i32_54 = arith.constant 2 : i32
    %194 = vector.broadcast %c2_i32_54 : i32 to vector<8x1xi32>
    %195 = arith.muli %194, %126 : vector<8x1xi32>
    %196 = vector.broadcast %164 : vector<1x128xi32> to vector<8x128xi32>
    %197 = vector.broadcast %195 : vector<8x1xi32> to vector<8x128xi32>
    %198 = arith.cmpi sle, %196, %197 : vector<8x128xi32>
    %c0_55 = arith.constant 0 : index
    %c0_56 = arith.constant 0 : index
    %c0_57 = arith.constant 0 : index
    %199 = vector.load %arg6[%c0_55, %c0_56, %c0_57] : memref<16x8x128xf32, #tpu.memory_space<vmem>>, vector<1x8x128xf32>
    %200 = vector.shape_cast %199 : vector<1x8x128xf32> to vector<8x128xf32>
    %c1_i32_58 = arith.constant 1 : i32
    %201 = vector.broadcast %c1_i32_58 : i32 to vector<1x128xi32>
    %202 = arith.cmpi sle, %164, %201 : vector<1x128xi32>
    %203 = vector.broadcast %202 : vector<1x128xi1> to vector<8x128xi1>
    %204 = arith.andi %203, %198 : vector<8x128xi1>
    %cst_59 = arith.constant -1.000000e+30 : f32
    %205 = vector.broadcast %cst_59 : f32 to vector<8x128xf32>
    %206 = arith.select %204, %200, %205 : vector<8x128xi1>, vector<8x128xf32>
    %c0_60 = arith.constant 0 : index
    %c0_61 = arith.constant 0 : index
    %207 = vector.load %arg7[%c0_60, %c0_61] : memref<8x128xf32, #tpu.memory_space<vmem>>, vector<8x128xf32>
    tpu.vector_store %arg7[%c0_60, %c0_61], %206 {strides = array<i32>} : memref<8x128xf32, #tpu.memory_space<vmem>>, vector<8x128xf32>,
    %c1_i32_62 = arith.constant 1 : i32
    %208 = arith.subi %131, %c1_i32_62 : i32
    %c1_i32_63 = arith.constant 1 : i32
    %c1_i32_64 = arith.constant 1 : i32
    %209 = arith.subi %c1_i32_63, %c1_i32_64 : i32
    %210 = arith.addi %208, %209 : i32
    %c1_i32_65 = arith.constant 1 : i32
    %211 = arith.divsi %210, %c1_i32_65 : i32
    %c1_i32_66 = arith.constant 1 : i32
    %c1_i32_67 = arith.constant 1 : i32
    %c0_i32_68 = arith.constant 0 : i32
    %212 = arith.subi %211, %c0_i32_68 : i32
    %213 = arith.addi %c0_i32_68, %212 : i32
    %c1_i32_69 = arith.constant 1 : i32
    scf.for %arg8 = %c0_i32_68 to %213 step %c1_i32_69  : i32 {
      %248 = arith.muli %arg8, %c1_i32_66 : i32
      %249 = arith.addi %c1_i32_67, %248 : i32
      %c0_82 = arith.constant 0 : index
      %c0_83 = arith.constant 0 : index
      %250 = vector.load %arg7[%c0_82, %c0_83] : memref<8x128xf32, #tpu.memory_space<vmem>>, vector<8x128xf32>
      %251 = arith.index_cast %249 : i32 to index
      %c0_84 = arith.constant 0 : index
      %c0_85 = arith.constant 0 : index
      %252 = vector.load %arg6[%251, %c0_84, %c0_85] : memref<16x8x128xf32, #tpu.memory_space<vmem>>, vector<1x8x128xf32>
      %253 = vector.shape_cast %252 : vector<1x8x128xf32> to vector<8x128xf32>
      %c1_i32_86 = arith.constant 1 : i32
      %254 = vector.broadcast %c1_i32_86 : i32 to vector<1x128xi32>
      %255 = arith.cmpi sge, %164, %254 : vector<1x128xi32>
      %c1_i32_87 = arith.constant 1 : i32
      %256 = tpu.dynamic_rotate %250 by %c1_i32_87 dim 1 : vector<8x128xf32>, i32 -> vector<8x128xf32>
      %cst_88 = arith.constant -1.000000e+30 : f32
      %257 = vector.shape_cast %255 : vector<1x128xi1> to vector<1x128xi1>
      %258 = vector.broadcast %257 : vector<1x128xi1> to vector<8x128xi1>
      %259 = vector.broadcast %cst_88 : f32 to vector<8x128xf32>
      %260 = arith.select %258, %256, %259 : vector<8x128xi1>, vector<8x128xf32>
      %c2_i32_89 = arith.constant 2 : i32
      %261 = vector.broadcast %c2_i32_89 : i32 to vector<1x128xi32>
      %262 = arith.cmpi sge, %164, %261 : vector<1x128xi32>
      %263 = arith.andi %182, %262 : vector<1x128xi1>
      %c2_i32_90 = arith.constant 2 : i32
      %264 = tpu.dynamic_rotate %250 by %c2_i32_90 dim 1 : vector<8x128xf32>, i32 -> vector<8x128xf32>
      %cst_91 = arith.constant -1.000000e+30 : f32
      %265 = vector.shape_cast %263 : vector<1x128xi1> to vector<1x128xi1>
      %266 = vector.broadcast %265 : vector<1x128xi1> to vector<8x128xi1>
      %267 = vector.broadcast %cst_91 : f32 to vector<8x128xf32>
      %268 = arith.select %266, %264, %267 : vector<8x128xi1>, vector<8x128xf32>
      %269 = arith.maximumf %250, %260 : vector<8x128xf32>
      %270 = arith.maximumf %269, %268 : vector<8x128xf32>
      %271 = arith.subf %250, %270 : vector<8x128xf32>
      %272 = math.exp %271 : vector<8x128xf32>
      %273 = arith.subf %260, %270 : vector<8x128xf32>
      %274 = math.exp %273 : vector<8x128xf32>
      %275 = arith.addf %272, %274 : vector<8x128xf32>
      %276 = arith.subf %268, %270 : vector<8x128xf32>
      %277 = math.exp %276 : vector<8x128xf32>
      %278 = arith.addf %275, %277 : vector<8x128xf32>
      %279 = arith.addf %253, %270 : vector<8x128xf32>
      %280 = math.log %278 : vector<8x128xf32>
      %281 = arith.addf %279, %280 : vector<8x128xf32>
      %cst_92 = arith.constant -1.000000e+30 : f32
      %282 = vector.broadcast %cst_92 : f32 to vector<8x128xf32>
      %283 = arith.select %198, %281, %282 : vector<8x128xi1>, vector<8x128xf32>
      %284 = vector.broadcast %249 : i32 to vector<8x1xi32>
      %285 = arith.cmpi slt, %284, %130 : vector<8x1xi32>
      %286 = vector.shape_cast %285 : vector<8x1xi1> to vector<8x1xi1>
      %287 = vector.broadcast %286 : vector<8x1xi1> to vector<8x128xi1>
      %288 = arith.select %287, %283, %250 : vector<8x128xi1>, vector<8x128xf32>
      %c0_93 = arith.constant 0 : index
      %c0_94 = arith.constant 0 : index
      %289 = vector.load %arg7[%c0_93, %c0_94] : memref<8x128xf32, #tpu.memory_space<vmem>>, vector<8x128xf32>
      tpu.vector_store %arg7[%c0_93, %c0_94], %288 {strides = array<i32>} : memref<8x128xf32, #tpu.memory_space<vmem>>, vector<8x128xf32>,
    }
    %c0_70 = arith.constant 0 : index
    %c0_71 = arith.constant 0 : index
    %214 = vector.load %arg7[%c0_70, %c0_71] : memref<8x128xf32, #tpu.memory_space<vmem>>, vector<8x128xf32>
    %215 = vector.broadcast %164 : vector<1x128xi32> to vector<8x128xi32>
    %216 = vector.broadcast %195 : vector<8x1xi32> to vector<8x128xi32>
    %217 = arith.cmpi eq, %215, %216 : vector<8x128xi32>
    %c1_i32_72 = arith.constant 1 : i32
    %218 = vector.broadcast %c1_i32_72 : i32 to vector<8x1xi32>
    %219 = arith.subi %195, %218 : vector<8x1xi32>
    %220 = vector.broadcast %164 : vector<1x128xi32> to vector<8x128xi32>
    %221 = vector.broadcast %219 : vector<8x1xi32> to vector<8x128xi32>
    %222 = arith.cmpi eq, %220, %221 : vector<8x128xi32>
    %223 = arith.ori %217, %222 : vector<8x128xi1>
    %cst_73 = arith.constant -1.000000e+30 : f32
    %224 = vector.broadcast %cst_73 : f32 to vector<8x128xf32>
    %225 = arith.select %223, %214, %224 : vector<8x128xi1>, vector<8x128xf32>
    %cst_74 = arith.constant dense<0xFF800000> : vector<8xf32>
    %226 = vector.multi_reduction <maximumf>, %225, %cst_74 [1] : vector<8x128xf32> to vector<8xf32>
    %227 = vector.shape_cast %226 : vector<8xf32> to vector<8x1xf32>
    %228 = vector.broadcast %227 : vector<8x1xf32> to vector<8x128xf32>
    %229 = arith.subf %225, %228 : vector<8x128xf32>
    %230 = math.exp %229 : vector<8x128xf32>
    %cst_75 = arith.constant dense<0.000000e+00> : vector<8xf32>
    %231 = vector.multi_reduction <add>, %230, %cst_75 [1] : vector<8x128xf32> to vector<8xf32>
    %232 = vector.shape_cast %231 : vector<8xf32> to vector<8x1xf32>
    %233 = math.log %232 : vector<8x1xf32>
    %234 = arith.addf %227, %233 : vector<8x1xf32>
    %c1_i32_76 = arith.constant 1 : i32
    %235 = vector.broadcast %c1_i32_76 : i32 to vector<8x1xi32>
    %236 = arith.maxsi %126, %235 : vector<8x1xi32>
    %237 = arith.sitofp %236 : vector<8x1xi32> to vector<8x1xf32>
    %cst_77 = arith.constant -9.99999956E+24 : f32
    %238 = vector.broadcast %cst_77 : f32 to vector<8x1xf32>
    %239 = arith.cmpf olt, %234, %238 : vector<8x1xf32>
    %cst_78 = arith.constant 0.000000e+00 : f32
    %240 = vector.broadcast %cst_78 : f32 to vector<8x1xf32>
    %241 = arith.subf %240, %234 : vector<8x1xf32>
    %242 = arith.divf %241, %237 : vector<8x1xf32>
    %cst_79 = arith.constant 0.000000e+00 : f32
    %243 = vector.broadcast %cst_79 : f32 to vector<8x1xf32>
    %244 = arith.select %239, %243, %242 : vector<8x1xi1>, vector<8x1xf32>
    %245 = vector.shape_cast %244 : vector<8x1xf32> to vector<8x1xf32>
    %246 = vector.broadcast %245 : vector<8x1xf32> to vector<8x128xf32>
    %c0_80 = arith.constant 0 : index
    %c0_81 = arith.constant 0 : index
    %247 = vector.load %arg5[%c0_80, %c0_81] : memref<8x128xf32, #tpu.memory_space<vmem>>, vector<8x128xf32>
    tpu.vector_store %arg5[%c0_80, %c0_81], %246 {strides = array<i32>} : memref<8x128xf32, #tpu.memory_space<vmem>>, vector<8x128xf32>,
    return
  }
  func.func @transform_0(%arg0: i32, %arg1: memref<8xi32, #tpu.memory_space<smem>>, %arg2: memref<8xi32, #tpu.memory_space<smem>>) -> (i32, i32, i32) {
    %c0_i32 = arith.constant 0 : i32
    %c0_i32_0 = arith.constant 0 : i32
    %c0_i32_1 = arith.constant 0 : i32
    return %c0_i32, %arg0, %c0_i32_0 : i32, i32, i32
  }
  func.func @transform_1(%arg0: i32, %arg1: memref<8xi32, #tpu.memory_space<smem>>, %arg2: memref<8xi32, #tpu.memory_space<smem>>) -> (i32, i32) {
    %c0_i32 = arith.constant 0 : i32
    %c0_i32_0 = arith.constant 0 : i32
    %c0_i32_1 = arith.constant 0 : i32
    return %c0_i32, %c0_i32_0 : i32, i32
  }
  func.func @transform_2(%arg0: i32, %arg1: memref<8xi32, #tpu.memory_space<smem>>, %arg2: memref<8xi32, #tpu.memory_space<smem>>) -> (i32, i32) {
    %c0_i32 = arith.constant 0 : i32
    %c0_i32_0 = arith.constant 0 : i32
    return %arg0, %c0_i32 : i32, i32
  }
}

</mosaic_0001>

<bundles_post_ra>
// kernel: tpu_custom_call.1
= control target key start
LH: loop header
LB: loop body
LE: loop exit
PB: predicated region body
PF: predicated region fallthrough
CT: control target
= control target key end

     0   :  { %s1136_s21 = smov [#allocation5]   ;;  %s1137_s22 = smov [#allocation6]   ;;  %s1766_s0 = inlined_call_operand.vmem [shape: s32[8], index: 0, kind: input, shape index: {}]   ;;  %s1767_s2 = inlined_call_operand.vmem [shape: f32[16,8,8], index: 2, kind: input, shape index: {}]   ;;  %s1768_s3 = inlined_call_operand.vmem [shape: f32[8,128], index: 3, kind: input, shape index: {}]   ;;  %s1769_s4 = inlined_call_operand.hbm [shape: f32[8,128], index: 4, kind: output, shape index: {}]   ;;  %s1770_s1 = inlined_call_operand.vmem [shape: s32[8], index: 1, kind: input, shape index: {}]  }
   0x1   :  { %s10_s17 = sshll.u32 %s1766_s0, 4  ;;  %s15_s20 = sshll.u32 %s1770_s1, 4  ;;  %s11_s17 = int_to_ptr.vmem [resolvable:$true] %s10_s17  ;;  %s16_s20 = int_to_ptr.vmem [resolvable:$true] %s15_s20 }
   0x2   :  { %13 = dma.vmem_to_smem %s11_s17, 16, %s1136_s21, [#allocation4] }
   0x3   :  { %18 = dma.vmem_to_smem %s16_s20, 16, %s1137_s22, [#allocation4] }
   0x4   :  { %1128 = dma.done.wait [#allocation4], 32 }
   0x5   :  { %1129 = vsyncadd [#allocation4], 4294967264 }
   0x6   :  { %21 = sfence }
   0x7   :  { %v28_v0 = vlaneseq  ;;  %s30_s23 = sld [smem:[#allocation5]] }
   0x8   :  { %22 = vsyncpa [#allocation8], 0  ;;  %s31_s24 = sld [smem:[#allocation6]]  ;;  %v134_v30 = vld [vmem:[%s1767_s2 + $0x48] sm:$0xff]  ;;  %v133_v31 = vld [vmem:[%s1767_s2 + $0x40] sm:$0xff]  ;;  %vm162_vm8 = vcmask 64512  }
   0x9   :  { %s849_s25 = sld [smem:[#allocation5 + $0x1]]  ;;  %v1173_v1 = vshrl.u32 %v28_v0, 7  ;;  %v1197_v27 = vand.u32 127, %v28_v0  ;;  %v125_v32 = vld [vmem:[%s1767_s2] sm:$0xff]  ;;  %v138_v43 = vld [vmem:[%s1767_s2 + $0x68] sm:$0xff]  ;;  %v135_v54 = vld [vmem:[%s1767_s2 + $0x50] sm:$0xff] }
   0xa   :  { %s850_s26 = sld [smem:[#allocation6 + $0x1]]  ;;  %v137_v44 = vld [vmem:[%s1767_s2 + $0x60] sm:$0xff]  ;;  %v126_v55 = vld [vmem:[%s1767_s2 + $0x8] sm:$0xff]  ;;  %v131_v63 = vld [vmem:[%s1767_s2 + $0x30] sm:$0xff] }
   0xb   :  { %s1175_s0 = sld [smem:[#allocation5 + $0x2]]  ;;  %vm34_vm0 = vcmp.eq.s32.totalorder %v1173_v1, 0  ;;  %vm46_vm1 = vcmp.eq.s32.totalorder %v1173_v1, 1  ;;  %vm58_vm2 = vcmp.eq.s32.totalorder %v1173_v1, 2  ;;  %vm70_vm3 = vcmp.eq.s32.totalorder %v1173_v1, 3  ;;  %1778 = vst [vmem:[#allocation11_spill] sm:$0xff] %v1197_v27 }
   0xc   :  { %s852_s1 = sld [smem:[#allocation6 + $0x2]]  ;;  %vm82_vm4 = vcmp.eq.s32.totalorder %v1173_v1, 4  ;;  %vm94_vm5 = vcmp.eq.s32.totalorder %v1173_v1, 5  ;;  %vm106_vm6 = vcmp.eq.s32.totalorder %v1173_v1, 6  ;;  %vm118_vm7 = vcmp.eq.s32.totalorder %v1173_v1, 7  ;;  %v129_v45 = vld [vmem:[%s1767_s2 + $0x20] sm:$0xff] }
   0xd   :  { %s1177_s27 = sld [smem:[#allocation5 + $0x3]]  ;;  %v35_v2 = vstv %s30_s23  ;;  %v130_v56 = vld [vmem:[%s1767_s2 + $0x28] sm:$0xff]  ;;  %v139_v0 = vld [vmem:[%s1767_s2 + $0x70] sm:$0xff] }
   0xe   :  { %p32_p0 = scmp.lt.s32.totalorder %s31_s24, 16  ;;  %p844_p1 = scmp.gt.s32.totalorder %s31_s24, 1  ;;  %v36_v3 = vsel %vm34_vm0, %v35_v2, 0  ;;  %v127_v1 = vld [vmem:[%s1767_s2 + $0x10] sm:$0xff] }
   0xf   :  { %s854_s28 = sld [smem:[#allocation6 + $0x3]]  ;;  %v47_v5 = vstv %s849_s25 }
  0x10   :  { %s1794_s24 = smov (!%p32_p0, %s31_s24), 16  ;;  %p44_p2 = scmp.lt.s32.totalorder %s850_s26, 16  ;;  %v48_v7 = vsel %vm46_vm1, %v47_v5, %v36_v3 }
  0x11   :  { %s1180_s29 = sld [smem:[#allocation5 + $0x4]]  ;;  %v37_v4 = vstv %s1794_s24  ;;  %s1796_s24 = smov (!%p844_p1, %s1794_s24), 1  ;;  %v59_v9 = vstv %s1175_s0 }
  0x12   :  { %v38_v6 = vsel %vm34_vm0, %v37_v4, 0  ;;  %s1798_s26 = smov (!%p44_p2, %s850_s26), 16  ;;  %p56_p3 = scmp.lt.s32.totalorder %s852_s1, 16  ;;  %v60_v11 = vsel %vm58_vm2, %v59_v9, %v48_v7  ;;  %v136_v9 = vld [vmem:[%s1767_s2 + $0x58] sm:$0xff] }
  0x13   :  { %s856_s30 = sld [smem:[#allocation6 + $0x4]]  ;;  %v49_v8 = vstv %s1798_s26  ;;  %p51_p4 = scmp.gt.s32.totalorder %s1796_s24, %s1798_s26  ;;  %v71_v13 = vstv %s1177_s27 }
  0x14   :  { %v50_v10 = vsel %vm46_vm1, %v49_v8, %v38_v6  ;;  %s1800_s1 = smov (!%p56_p3, %s852_s1), 16  ;;  %s857_s5 = sld [smem:[#allocation5 + $0x5]]  ;;  %v72_v16 = vsel %vm70_vm3, %v71_v13, %v60_v11  ;;  %v128_v8 = vld [vmem:[%s1767_s2 + $0x18] sm:$0xff] }
  0x15   :  { %p68_p5 = scmp.lt.s32.totalorder %s854_s28, 16  ;;  %s1802_s24 = smov (!%p51_p4, %s1796_s24), %s1798_s26  ;;  %v61_v12 = vstv %s1800_s1 }
  0x16   :  { %v62_v14 = vsel %vm58_vm2, %v61_v12, %v50_v10  ;;  %p63_p6 = scmp.gt.s32.totalorder %s1802_s24, %s1800_s1  ;;  %s858_s6 = sld [smem:[#allocation6 + $0x5]]  ;;  %v140_v10 = vld [vmem:[%s1767_s2 + $0x78] sm:$0xff] }
  0x17   :  { %s1804_s28 = smov (!%p68_p5, %s854_s28), 16  ;;  %v83_v18 = vstv %s1180_s29  ;;  %s859_s7 = sld [smem:[#allocation5 + $0x6]] }
  0x18   :  { %v73_v15 = vstv %s1804_s28  ;;  %s1806_s24 = smov (!%p63_p6, %s1802_s24), %s1800_s1  ;;  %v84_v19 = vsel %vm82_vm4, %v83_v18, %v72_v16  ;;  %s860_s8 = sld [smem:[#allocation6 + $0x6]] }
  0x19   :  { %p80_p7 = scmp.lt.s32.totalorder %s856_s30, 16  ;;  %v74_v17 = vsel %vm70_vm3, %v73_v15, %v62_v14  ;;  %p75_p8 = scmp.gt.s32.totalorder %s1806_s24, %s1804_s28 }
  0x1a   :  { %v95_v22 = vstv %s857_s5  ;;  %s861_s9 = sld [smem:[#allocation5 + $0x7]] }
  0x1b   :  { %s1808_s30 = smov (!%p80_p7, %s856_s30), 16  ;;  %s1810_s24 = smov (!%p75_p8, %s1806_s24), %s1804_s28  ;;  %v96_v23 = vsel %vm94_vm5, %v95_v22, %v84_v19 }
  0x1c   :  { %v85_v20 = vstv %s1808_s30  ;;  %p92_p9 = scmp.lt.s32.totalorder %s858_s6, 16  ;;  %p87_p10 = scmp.gt.s32.totalorder %s1810_s24, %s1808_s30 }
  0x1d   :  { %v86_v21 = vsel %vm82_vm4, %v85_v20, %v74_v17  ;;  %s862_s10 = sld [smem:[#allocation6 + $0x7]]  ;;  %v107_v24 = vstv %s859_s7  ;;  %v132_v17 = vld [vmem:[%s1767_s2 + $0x38] sm:$0xff] }
  0x1e   :  { %s1812_s6 = smov (!%p92_p9, %s858_s6), 16  ;;  %s1814_s24 = smov (!%p87_p10, %s1810_s24), %s1808_s30  ;;  %v108_v26 = vsel %vm106_vm6, %v107_v24, %v96_v23 }
  0x1f   :  { %v97_v25 = vstv %s1812_s6  ;;  %p104_p11 = scmp.lt.s32.totalorder %s860_s8, 16  ;;  %p99_p12 = scmp.gt.s32.totalorder %s1814_s24, %s1812_s6 }
  0x20   :  { %v98_v28 = vsel %vm94_vm5, %v97_v25, %v86_v21  ;;  %v119_v29 = vstv %s861_s9 }
  0x21   :  { %s1816_s8 = smov (!%p104_p11, %s860_s8), 16  ;;  %s1818_s24 = smov (!%p99_p12, %s1814_s24), %s1812_s6  ;;  %v1212_v33 = vsel %vm118_vm7, %v119_v29, %v108_v26 }
  0x22   :  { %1779 = vst [vmem:[#allocation12_spill] sm:$0xff] %v1212_v33  ;;  %v109_v34 = vstv %s1816_s8  ;;  %vm1216_vm9 = vcmp.lt.s32.totalorder %v1197_v27, %v1212_v33  ;;  %p111_p0 = scmp.gt.s32.totalorder %s1818_s24, %s1816_s8 }
  0x23   :  { %p116_p13 = scmp.lt.s32.totalorder %s862_s10, 16  ;;  %v110_v36 = vsel %vm106_vm6, %v109_v34, %v98_v28  ;;  %v1224_v37 = vsel %vm1216_vm9, %v134_v30, -1e+30  ;;  %v1228_v38 = vsel %vm1216_vm9, %v133_v31, -1e+30 }
  0x24   :  { %v1232_v39 = vsel %vm1216_vm9, %v125_v32, -1e+30  ;;  %v190_v40 = vsel %vm162_vm8, %v1224_v37, -inf  ;;  %v187_v41 = vsel %vm162_vm8, %v1228_v38, -inf  ;;  %s1822_s24 = smov (!%p111_p0, %s1818_s24), %s1816_s8  ;;  %v1255_v48 = vsel %vm1216_vm9, %v138_v43, -1e+30 }
  0x25   :  { %s1820_s10 = smov (!%p116_p13, %s862_s10), 16  ;;  %v163_v42 = vsel %vm162_vm8, %v1232_v39, -inf  ;;  %191 = vmax.xlane.f32.xlu2 %v190_v40  ;;  %188 = vmax.xlane.f32.xlu0 %v187_v41  ;;  %v1259_v49 = vsel %vm1216_vm9, %v137_v44, -1e+30  ;;  %v1263_v50 = vsel %vm1216_vm9, %v129_v45, -1e+30 }
  0x26   :  { %v121_v46 = vstv %s1820_s10  ;;  %164 = vmax.xlane.f32.xlu1 %v163_v42  ;;  %p123_p1 = scmp.gt.s32.totalorder %s1822_s24, %s1820_s10  ;;  %v202_v51 = vsel %vm162_vm8, %v1255_v48, -inf  ;;  %v199_v52 = vsel %vm162_vm8, %v1259_v49, -inf  ;;  %v175_v53 = vsel %vm162_vm8, %v1263_v50, -inf }
  0x27   :  { %v1251_v47 = vsel %vm118_vm7, %v121_v46, %v110_v36  ;;  %v1285_v57 = vsel %vm1216_vm9, %v135_v54, -1e+30  ;;  %v1289_v58 = vsel %vm1216_vm9, %v126_v55, -1e+30  ;;  %v1293_v59 = vsel %vm1216_vm9, %v130_v56, -1e+30 }
  0x28   :  { %1782 = vst [vmem:[#allocation13_spill] sm:$0xff] %v1251_v47  ;;  %s1824_s24 = smov (!%p123_p1, %s1822_s24), %s1820_s10  ;;  %v193_v60 = vsel %vm162_vm8, %v1285_v57, -inf  ;;  %v166_v61 = vsel %vm162_vm8, %v1289_v58, -inf  ;;  %v178_v62 = vsel %vm162_vm8, %v1293_v59, -inf  ;;  %v1312_v2 = vsel %vm1216_vm9, %v131_v63, -1e+30 }
  0x29   :  { %s879_s23 = sadd.s32 4294967295, %s1824_s24  ;;  %v1316_v3 = vsel %vm1216_vm9, %v139_v0, -1e+30  ;;  %v1320_v4 = vsel %vm1216_vm9, %v127_v1, -1e+30  ;;  %v181_v5 = vsel %vm162_vm8, %v1312_v2, -inf }
  0x2a   :  { %v205_v6 = vsel %vm162_vm8, %v1316_v3, -inf  ;;  %v169_v7 = vsel %vm162_vm8, %v1320_v4, -inf  ;;  %v1339_v11 = vsel %vm1216_vm9, %v128_v8, -1e+30  ;;  %v1343_v12 = vsel %vm1216_vm9, %v136_v9, -1e+30 }
  0x2b   :  { %v1347_v13 = vsel %vm1216_vm9, %v140_v10, -1e+30  ;;  %v172_v14 = vsel %vm162_vm8, %v1339_v11, -inf  ;;  %v196_v15 = vsel %vm162_vm8, %v1343_v12, -inf  ;;  %v1360_v18 = vsel %vm1216_vm9, %v132_v17, -1e+30 }
  0x2c   :  { %v208_v16 = vsel %vm162_vm8, %v1347_v13, -inf  ;;  %1783 = vst [vmem:[#allocation14_spill] sm:$0xff] %v1360_v18  ;;  %v184_v19 = vsel %vm162_vm8, %v1360_v18, -inf  ;;  %p880_p2 = scmp.le.s32.totalorder %s879_s23, 0 }
  0x2d   :  { %203 = vmax.xlane.f32.xlu2 %v202_v51  ;;  %200 = vmax.xlane.f32.xlu0 %v199_v52 }
  0x2e   :  { %176 = vmax.xlane.f32.xlu1 %v175_v53 }
  0x35   :  { %194 = vmax.xlane.f32.xlu2 %v193_v60  ;;  %167 = vmax.xlane.f32.xlu0 %v166_v61 }
  0x36   :  { %179 = vmax.xlane.f32.xlu1 %v178_v62 }
  0x3d   :  { %182 = vmax.xlane.f32.xlu2 %v181_v5  ;;  %206 = vmax.xlane.f32.xlu0 %v205_v6 }
  0x3e   :  { %170 = vmax.xlane.f32.xlu1 %v169_v7 }
  0x45   :  { %173 = vmax.xlane.f32.xlu2 %v172_v14  ;;  %197 = vmax.xlane.f32.xlu0 %v196_v15 }
  0x46   :  { %209 = vmax.xlane.f32.xlu1 %v208_v16 }
  0x4d   :  { %185 = vmax.xlane.f32.xlu0 %v184_v19 }
  0x98   :  { %v1364_v20 = vpop.xlane.xlu2 %191  ;;  %v1366_v21 = vpop.xlane.xlu0 %188 }
  0x99   :  { %v219_v22 = vsub.f32 %v1228_v38, %v1366_v21  ;;  %v1370_v23 = vpop.xlane.xlu1 %164  ;;  %v220_v41 = vsub.f32 %v1224_v37, %v1364_v20 }
  0x9a   :  { %v211_v24 = vsub.f32 %v1232_v39, %v1370_v23 }
  0x9b   :  { %v243_v25 = vmul.f32 1.442695, %v219_v22  ;;  %v245_v46 = vmul.f32 1.442695, %v220_v41 }
  0x9c   :  { %v227_v26 = vmul.f32 1.442695, %v211_v24 }
  0x9d   :  { %902 = vpow2.f32 %v243_v25 }
  0x9e   :  { %904 = vpow2.f32 %v227_v26 }
  0xa0   :  { %v1374_v28 = vpop.xlane.xlu2 %203  ;;  %v1376_v29 = vpop.xlane.xlu0 %200 }
  0xa1   :  { %v224_v30 = vsub.f32 %v1255_v48, %v1374_v28  ;;  %v223_v31 = vsub.f32 %v1259_v49, %v1376_v29  ;;  %v1382_v32 = vpop.xlane.xlu1 %176 }
  0xa2   :  { %v215_v34 = vsub.f32 %v1263_v50, %v1382_v32 }
  0xa3   :  { %v253_v35 = vmul.f32 1.442695, %v224_v30  ;;  %v251_v36 = vmul.f32 1.442695, %v223_v31  ;;  %v903_v40 = vpop.eup %902 }
  0xa4   :  { %v235_v42 = vmul.f32 1.442695, %v215_v34  ;;  %v905_v43 = vpop.eup %904  ;;  %v283_v44 = vsel %vm162_vm8, %v903_v40, 0.0 }
  0xa5   :  { %906 = vpow2.f32 %v253_v35  ;;  %284 = vadd.xlane.f32.xlu1 %v283_v44  ;;  %v259_v45 = vsel %vm162_vm8, %v905_v43, 0.0 }
  0xa6   :  { %908 = vpow2.f32 %v251_v36  ;;  %260 = vadd.xlane.f32.xlu0 %v259_v45 }
  0xa7   :  { %910 = vpow2.f32 %v235_v42 }
  0xa8   :  { %v1390_v51 = vpop.xlane.xlu2 %194  ;;  %v1392_v52 = vpop.xlane.xlu0 %167  ;;  %912 = vpow2.f32 %v245_v46 }
  0xa9   :  { %v221_v53 = vsub.f32 %v1285_v57, %v1390_v51  ;;  %v212_v54 = vsub.f32 %v1289_v58, %v1392_v52  ;;  %v1398_v55 = vpop.xlane.xlu1 %179 }
  0xaa   :  { %v216_v56 = vsub.f32 %v1293_v59, %v1398_v55 }
  0xab   :  { %v907_v60 = vpop.eup %906  ;;  %v247_v61 = vmul.f32 1.442695, %v221_v53  ;;  %v229_v62 = vmul.f32 1.442695, %v212_v54 }
  0xac   :  { %v909_v63 = vpop.eup %908  ;;  %v298_v0 = vsel %vm162_vm8, %v907_v60, 0.0  ;;  %v237_v7 = vmul.f32 1.442695, %v216_v56 }
  0xad   :  { %v911_v1 = vpop.eup %910  ;;  %914 = vpow2.f32 %v247_v61  ;;  %v295_v5 = vsel %vm162_vm8, %v909_v63, 0.0 }
  0xae   :  { %916 = vpow2.f32 %v229_v62  ;;  %296 = vadd.xlane.f32.xlu2 %v295_v5  ;;  %v271_v6 = vsel %vm162_vm8, %v911_v1, 0.0  ;;  %299 = vadd.xlane.f32.xlu0 %v298_v0  ;;  %v913_v16 = vpop.eup %912 }
  0xaf   :  { %272 = vadd.xlane.f32.xlu1 %v271_v6  ;;  %918 = vpow2.f32 %v237_v7  ;;  %v286_v30 = vsel %vm162_vm8, %v913_v16, 0.0 }
  0xb0   :  { %v1405_v8 = vpop.xlane.xlu2 %182  ;;  %v1407_v9 = vpop.xlane.xlu0 %206 }
  0xb1   :  { %v217_v10 = vsub.f32 %v1312_v2, %v1405_v8  ;;  %v225_v14 = vsub.f32 %v1316_v3, %v1407_v9  ;;  %v1413_v15 = vpop.xlane.xlu1 %170 }
  0xb2   :  { %v213_v17 = vsub.f32 %v1320_v4, %v1413_v15 }
  0xb3   :  { %v915_v19 = vpop.eup %914  ;;  %v239_v22 = vmul.f32 1.442695, %v217_v10  ;;  %v255_v24 = vmul.f32 1.442695, %v225_v14 }
  0xb4   :  { %v917_v25 = vpop.eup %916  ;;  %v289_v26 = vsel %vm162_vm8, %v915_v19, 0.0  ;;  %v231_v34 = vmul.f32 1.442695, %v213_v17 }
  0xb5   :  { %920 = vpow2.f32 %v239_v22  ;;  %v262_v31 = vsel %vm162_vm8, %v917_v25, 0.0  ;;  %v919_v35 = vpop.eup %918 }
  0xb6   :  { %922 = vpow2.f32 %v255_v24  ;;  %287 = vadd.xlane.f32.xlu2 %v286_v30  ;;  %290 = vadd.xlane.f32.xlu0 %v289_v26  ;;  %v274_v54 = vsel %vm162_vm8, %v919_v35, 0.0 }
  0xb7   :  { %263 = vadd.xlane.f32.xlu1 %v262_v31  ;;  %924 = vpow2.f32 %v231_v34 }
  0xb8   :  { %v1420_v36 = vpop.xlane.xlu2 %173  ;;  %v1422_v40 = vpop.xlane.xlu0 %197 }
  0xb9   :  { %v214_v41 = vsub.f32 %v1339_v11, %v1420_v36  ;;  %v222_v42 = vsub.f32 %v1343_v12, %v1422_v40  ;;  %v1428_v43 = vpop.xlane.xlu1 %209 }
  0xba   :  { %v226_v44 = vsub.f32 %v1347_v13, %v1428_v43 }
  0xbb   :  { %v921_v45 = vpop.eup %920  ;;  %v233_v46 = vmul.f32 1.442695, %v214_v41  ;;  %v249_v53 = vmul.f32 1.442695, %v222_v42 }
  0xbc   :  { %v923_v56 = vpop.eup %922  ;;  %v277_v60 = vsel %vm162_vm8, %v921_v45, 0.0  ;;  %v257_v62 = vmul.f32 1.442695, %v226_v44 }
  0xbd   :  { %926 = vpow2.f32 %v233_v46  ;;  %v301_v61 = vsel %vm162_vm8, %v923_v56, 0.0  ;;  %v925_v63 = vpop.eup %924 }
  0xbe   :  { %928 = vpow2.f32 %v249_v53  ;;  %275 = vadd.xlane.f32.xlu2 %v274_v54  ;;  %278 = vadd.xlane.f32.xlu0 %v277_v60  ;;  %v265_v7 = vsel %vm162_vm8, %v925_v63, 0.0 }
  0xbf   :  { %302 = vadd.xlane.f32.xlu1 %v301_v61  ;;  %930 = vpow2.f32 %v257_v62 }
  0xc0   :  { %v1435_v0 = vpop.xlane.xlu0 %185 }
  0xc1   :  { %v218_v1 = vsub.f32 %v1360_v18, %v1435_v0 }
  0xc3   :  { %v927_v5 = vpop.eup %926  ;;  %v241_v6 = vmul.f32 1.442695, %v218_v1 }
  0xc4   :  { %v929_v10 = vpop.eup %928  ;;  %v268_v14 = vsel %vm162_vm8, %v927_v5, 0.0 }
  0xc5   :  { %932 = vpow2.f32 %v241_v6  ;;  %v292_v16 = vsel %vm162_vm8, %v929_v10, 0.0  ;;  %v931_v17 = vpop.eup %930 }
  0xc6   :  { %266 = vadd.xlane.f32.xlu2 %v265_v7  ;;  %269 = vadd.xlane.f32.xlu0 %v268_v14  ;;  %v304_v22 = vsel %vm162_vm8, %v931_v17, 0.0 }
  0xc7   :  { %293 = vadd.xlane.f32.xlu1 %v292_v16 }
  0xcb   :  { %v933_v19 = vpop.eup %932 }
  0xcc   :  { %v280_v24 = vsel %vm162_vm8, %v933_v19, 0.0 }
  0xce   :  { %305 = vadd.xlane.f32.xlu2 %v304_v22 }
  0xcf   :  { %281 = vadd.xlane.f32.xlu1 %v280_v24 }
 0x118   :  { %v285_v25 = vpop.xlane.xlu1 %284 }
 0x119   :  { %v261_v26 = vpop.xlane.xlu0 %260  ;;  %934 = vlog2.f32 %v285_v25  ;;  %v576_v25 = vld [vmem:[%s1768_s3] sm:$0xff]  ;;  %s1738_s3 = smov (!%p880_p2), 0  }
 0x11a   :  { %936 = vlog2.f32 %v261_v26  ;;  %640 = vmatpush.msra.mxu0 %v576_v25  ;;  %887 = vmatpush.msra.mxu2 %v576_v25 }
 0x11b   :  { %886 = vmatpush.msra.mxu1 %v576_v25  ;;  %888 = vmatpush.msra.mxu3 %v576_v25 }
 0x11f   :  { %v935_v30 = vpop.eup %934 }
 0x120   :  { %v937_v31 = vpop.eup %936  ;;  %v324_v34 = vmul.f32 0.6931472, %v935_v30 }
 0x121   :  { %v297_v35 = vpop.xlane.xlu2 %296  ;;  %v308_v41 = vmul.f32 0.6931472, %v937_v31  ;;  %v300_v42 = vpop.xlane.xlu0 %299 }
 0x122   :  { %938 = vlog2.f32 %v297_v35  ;;  %v273_v44 = vpop.xlane.xlu1 %272  ;;  %v347_v45 = vadd.f32 %v324_v34, %v1366_v21 }
 0x123   :  { %940 = vlog2.f32 %v300_v42  ;;  %v339_v46 = vadd.f32 %v308_v41, %v1370_v23 }
 0x124   :  { %942 = vlog2.f32 %v273_v44  ;;  %v1446_v53 = vmax.f32 %v347_v45, -1.0 }
 0x125   :  { %v1448_v54 = vmax.f32 %v339_v46, -1.0 }
 0x126   :  { %v379_v56 = vsub.f32 %v347_v45, %v1446_v53  ;;  %v427_v60 = vsub.f32 -1.0, %v1446_v53 }
 0x127   :  { %v371_v62 = vsub.f32 %v339_v46, %v1448_v54  ;;  %v419_v63 = vsub.f32 -1.0, %v1448_v54 }
 0x128   :  { %v939_v61 = vpop.eup %938  ;;  %v403_v5 = vmul.f32 1.442695, %v379_v56  ;;  %v451_v21 = vmul.f32 1.442695, %v427_v60 }
 0x129   :  { %v941_v1 = vpop.eup %940  ;;  %v332_v6 = vmul.f32 0.6931472, %v939_v61  ;;  %v288_v7 = vpop.xlane.xlu2 %287  ;;  %v387_v10 = vmul.f32 1.442695, %v371_v62  ;;  %v435_v14 = vmul.f32 1.442695, %v419_v63 }
 0x12a   :  { %v943_v23 = vpop.eup %942  ;;  %v334_v16 = vmul.f32 0.6931472, %v941_v1  ;;  %944 = vlog2.f32 %v288_v7  ;;  %v291_v17 = vpop.xlane.xlu0 %290 }
 0x12b   :  { %946 = vpow2.f32 %v403_v5  ;;  %v351_v19 = vadd.f32 %v332_v6, %v1376_v29  ;;  %v316_v22 = vmul.f32 0.6931472, %v943_v23  ;;  %v264_v31 = vpop.xlane.xlu1 %263 }
 0x12c   :  { %948 = vpow2.f32 %v387_v10  ;;  %v352_v24 = vadd.f32 %v334_v16, %v1374_v28 }
 0x12d   :  { %950 = vpow2.f32 %v435_v14  ;;  %v1459_v26 = vmax.f32 %v351_v19, -1.0  ;;  %v343_v30 = vadd.f32 %v316_v22, %v1382_v32 }
 0x12e   :  { %952 = vpow2.f32 %v451_v21  ;;  %v1462_v34 = vmax.f32 %v352_v24, -1.0 }
 0x12f   :  { %v383_v29 = vsub.f32 %v351_v19, %v1459_v26  ;;  %v431_v28 = vsub.f32 -1.0, %v1459_v26  ;;  %v1466_v35 = vmax.f32 %v343_v30, -1.0  ;;  %954 = vlog2.f32 %v291_v17 }
 0x130   :  { %v945_v41 = vpop.eup %944  ;;  %v384_v42 = vsub.f32 %v352_v24, %v1462_v34  ;;  %v432_v32 = vsub.f32 -1.0, %v1462_v34  ;;  %956 = vlog2.f32 %v264_v31 }
 0x131   :  { %v1470_v44 = vpop.eup %946  ;;  %v411_v45 = vmul.f32 1.442695, %v383_v29  ;;  %v459_v46 = vmul.f32 1.442695, %v431_v28  ;;  %v375_v56 = vsub.f32 %v343_v30, %v1466_v35  ;;  %v423_v60 = vsub.f32 -1.0, %v1466_v35  ;;  %v276_v61 = vpop.xlane.xlu2 %275 }
 0x132   :  { %v1474_v62 = vpop.eup %948  ;;  %v413_v63 = vmul.f32 1.442695, %v384_v42  ;;  %v461_v1 = vmul.f32 1.442695, %v432_v32  ;;  %v326_v5 = vmul.f32 0.6931472, %v945_v41  ;;  %v279_v21 = vpop.xlane.xlu0 %278  ;;  %958 = vlog2.f32 %v276_v61 }
 0x133   :  { %v1476_v6 = vpop.eup %950  ;;  %960 = vpow2.f32 %v411_v45  ;;  %v395_v7 = vmul.f32 1.442695, %v375_v56  ;;  %v443_v10 = vmul.f32 1.442695, %v423_v60  ;;  %v303_v25 = vpop.xlane.xlu1 %302 }
 0x134   :  { %v1478_v23 = vpop.eup %952  ;;  %962 = vpow2.f32 %v459_v46  ;;  %v348_v14 = vadd.f32 %v326_v5, %v1364_v20 }
 0x135   :  { %v955_v16 = vpop.eup %954  ;;  %964 = vpow2.f32 %v413_v63 }
 0x136   :  { %v957_v17 = vpop.eup %956  ;;  %966 = vpow2.f32 %v461_v1  ;;  %v1481_v19 = vmax.f32 %v348_v14, -1.0  ;;  %v328_v22 = vmul.f32 0.6931472, %v955_v16 }
 0x137   :  { %968 = vpow2.f32 %v395_v7  ;;  %v310_v24 = vmul.f32 0.6931472, %v957_v17 }
 0x138   :  { %v959_v30 = vpop.eup %958  ;;  %970 = vpow2.f32 %v443_v10  ;;  %v380_v31 = vsub.f32 %v348_v14, %v1481_v19  ;;  %v428_v29 = vsub.f32 -1.0, %v1481_v19  ;;  %v349_v28 = vadd.f32 %v328_v22, %v1390_v51 }
 0x139   :  { %v1486_v41 = vpop.eup %960  ;;  %v340_v20 = vadd.f32 %v310_v24, %v1392_v52  ;;  %972 = vlog2.f32 %v279_v21  ;;  %v318_v42 = vmul.f32 0.6931472, %v959_v30  ;;  %v267_v1 = vpop.xlane.xlu2 %266 }
 0x13a   :  { %v1489_v32 = vpop.eup %962  ;;  %v405_v45 = vmul.f32 1.442695, %v380_v31  ;;  %v453_v46 = vmul.f32 1.442695, %v428_v29  ;;  %v1491_v56 = vmax.f32 %v349_v28, -1.0  ;;  %974 = vlog2.f32 %v303_v25  ;;  %v270_v60 = vpop.xlane.xlu0 %269 }
 0x13b   :  { %v1493_v61 = vpop.eup %964  ;;  %v1495_v63 = vmax.f32 %v340_v20, -1.0  ;;  %v344_v51 = vadd.f32 %v318_v42, %v1398_v55  ;;  %976 = vlog2.f32 %v270_v60 }
 0x13c   :  { %v1498_v5 = vpop.eup %966  ;;  %978 = vpow2.f32 %v405_v45  ;;  %v381_v52 = vsub.f32 %v349_v28, %v1491_v56  ;;  %v429_v21 = vsub.f32 -1.0, %v1491_v56 }
 0x13d   :  { %v1502_v7 = vpop.eup %968  ;;  %980 = vpow2.f32 %v453_v46  ;;  %v372_v10 = vsub.f32 %v340_v20, %v1495_v63  ;;  %v420_v14 = vsub.f32 -1.0, %v1495_v63  ;;  %v1506_v16 = vmax.f32 %v344_v51, -1.0 }
 0x13e   :  { %v1508_v17 = vpop.eup %970  ;;  %v407_v55 = vmul.f32 1.442695, %v381_v52  ;;  %v455_v22 = vmul.f32 1.442695, %v429_v21  ;;  %982 = vlog2.f32 %v267_v1 }
 0x13f   :  { %v973_v24 = vpop.eup %972  ;;  %v389_v25 = vmul.f32 1.442695, %v372_v10  ;;  %v437_v30 = vmul.f32 1.442695, %v420_v14  ;;  %v376_v31 = vsub.f32 %v344_v51, %v1506_v16  ;;  %v424_v29 = vsub.f32 -1.0, %v1506_v16  ;;  %v294_v10 = vpop.xlane.xlu1 %293 }
 0x140   :  { %v975_v28 = vpop.eup %974  ;;  %984 = vpow2.f32 %v407_v55  ;;  %v320_v42 = vmul.f32 0.6931472, %v973_v24  ;;  %v467_v14 = vadd.f32 %v1476_v6, %v1474_v62 }
 0x141   :  { %v977_v20 = vpop.eup %976  ;;  %986 = vpow2.f32 %v455_v22  ;;  %v397_v45 = vmul.f32 1.442695, %v376_v31  ;;  %v445_v46 = vmul.f32 1.442695, %v424_v29  ;;  %v336_v60 = vmul.f32 0.6931472, %v975_v28  ;;  %v306_v62 = vpop.xlane.xlu2 %305 }
 0x142   :  { %v1512_v47 = vpop.eup %978  ;;  %988 = vpow2.f32 %v389_v25  ;;  %v345_v1 = vadd.f32 %v320_v42, %v1405_v8  ;;  %v314_v52 = vmul.f32 0.6931472, %v977_v20 }
 0x143   :  { %v1515_v21 = vpop.eup %980  ;;  %990 = vpow2.f32 %v437_v30  ;;  %v353_v51 = vadd.f32 %v336_v60, %v1407_v9 }
 0x144   :  { %v983_v55 = vpop.eup %982  ;;  %v1520_v22 = vmax.f32 %v345_v1, -1.0  ;;  %992 = vpow2.f32 %v397_v45  ;;  %v342_v24 = vadd.f32 %v314_v52, %v1420_v36 }
 0x145   :  { %994 = vpow2.f32 %v445_v46  ;;  %v1523_v25 = vmax.f32 %v353_v51, -1.0  ;;  %v312_v8 = vmul.f32 0.6931472, %v983_v55 }
 0x146   :  { %v1525_v31 = vpop.eup %984  ;;  %v377_v30 = vsub.f32 %v345_v1, %v1520_v22  ;;  %v425_v9 = vsub.f32 -1.0, %v1520_v22  ;;  %v1529_v29 = vmax.f32 %v342_v24, -1.0  ;;  %996 = vlog2.f32 %v294_v10 }
 0x147   :  { %v1531_v6 = vpop.eup %986  ;;  %v385_v28 = vsub.f32 %v353_v51, %v1523_v25  ;;  %v433_v36 = vsub.f32 -1.0, %v1523_v25  ;;  %v341_v42 = vadd.f32 %v312_v8, %v1413_v15  ;;  %998 = vlog2.f32 %v467_v14 }
 0x148   :  { %v989_v20 = vpop.eup %988  ;;  %v399_v45 = vmul.f32 1.442695, %v377_v30  ;;  %v447_v46 = vmul.f32 1.442695, %v425_v9  ;;  %v374_v60 = vsub.f32 %v342_v24, %v1529_v29  ;;  %v422_v1 = vsub.f32 -1.0, %v1529_v29 }
 0x149   :  { %v991_v52 = vpop.eup %990  ;;  %v415_v55 = vmul.f32 1.442695, %v385_v28  ;;  %v463_v10 = vmul.f32 1.442695, %v433_v36  ;;  %v1538_v27 = vmax.f32 %v341_v42, -1.0  ;;  %1000 = vlog2.f32 %v306_v62 }
 0x14a   :  { %v1540_v33 = vpop.eup %992  ;;  %1002 = vpow2.f32 %v399_v45  ;;  %v393_v51 = vmul.f32 1.442695, %v374_v60  ;;  %v441_v15 = vmul.f32 1.442695, %v422_v1  ;;  %v475_v45 = vadd.f32 %v1478_v23, %v1470_v44 }
 0x14b   :  { %v995_v18 = vpop.eup %994  ;;  %1004 = vpow2.f32 %v447_v46  ;;  %v373_v14 = vsub.f32 %v341_v42, %v1538_v27  ;;  %v421_v8 = vsub.f32 -1.0, %v1538_v27  ;;  %v479_v44 = vadd.f32 %v1489_v32, %v1486_v41 }
 0x14c   :  { %v997_v24 = vpop.eup %996  ;;  %1006 = vpow2.f32 %v415_v55 }
 0x14d   :  { %v999_v30 = vpop.eup %998  ;;  %1008 = vpow2.f32 %v463_v10  ;;  %v391_v9 = vmul.f32 1.442695, %v373_v14  ;;  %v439_v28 = vmul.f32 1.442695, %v421_v8  ;;  %v330_v36 = vmul.f32 0.6931472, %v997_v24  ;;  %v282_v10 = vpop.xlane.xlu1 %281 }
 0x14e   :  { %1010 = vpow2.f32 %v393_v51  ;;  %v484_v62 = vmul.f32 0.6931472, %v999_v30  ;;  %v471_v14 = vadd.f32 %v1508_v17, %v1502_v7 }
 0x14f   :  { %v1001_v60 = vpop.eup %1000  ;;  %1012 = vpow2.f32 %v441_v15  ;;  %v350_v46 = vadd.f32 %v330_v36, %v1422_v40 }
 0x150   :  { %v1547_v1 = vpop.eup %1002  ;;  %1014 = vpow2.f32 %v391_v9  ;;  %v1550_v42 = vadd.f32 %v484_v62, %v1448_v54  ;;  %v338_v55 = vmul.f32 0.6931472, %v1001_v60  ;;  %v468_v54 = vadd.f32 %v991_v52, %v989_v20 }
 0x151   :  { %v1005_v51 = vpop.eup %1004  ;;  %1016 = vpow2.f32 %v439_v28  ;;  %v1554_v8 = vmax.f32 %v350_v46, -1.0 }
 0x152   :  { %v1007_v23 = vpop.eup %1006  ;;  %v531_v40 = vsub.f32 %v1232_v39, %v1550_v42  ;;  %v354_v15 = vadd.f32 %v338_v55, %v1428_v43  ;;  %1018 = vlog2.f32 %v475_v45  ;;  %v476_v43 = vadd.f32 %v1515_v21, %v1512_v47 }
 0x153   :  { %v1009_v24 = vpop.eup %1008  ;;  %v382_v30 = vsub.f32 %v350_v46, %v1554_v8  ;;  %v430_v7 = vsub.f32 -1.0, %v1554_v8  ;;  %1020 = vlog2.f32 %v282_v10  ;;  %v480_v46 = vadd.f32 %v1498_v5, %v1493_v61 }
 0x154   :  { %v1563_v17 = vpop.eup %1010  ;;  %863 = vmatmul.msk.f32.vlgmr.msra.gmra.mxu0 %vm162_vm8, %v531_v40  ;;  %v1566_v9 = vmax.f32 %v354_v15, -1.0  ;;  %1022 = vlog2.f32 %v471_v14  ;;  %v472_v47 = vadd.f32 %v995_v18, %v1540_v33 }
 0x155   :  { %v1013_v41 = vpop.eup %1012  ;;  %v409_v32 = vmul.f32 1.442695, %v382_v30  ;;  %v457_v39 = vmul.f32 1.442695, %v430_v7  ;;  %1024 = vlog2.f32 %v479_v44  ;;  %v477_v44 = vadd.f32 %v1531_v6, %v1525_v31 }
 0x156   :  { %v1015_v20 = vpop.eup %1014  ;;  %v386_v52 = vsub.f32 %v354_v15, %v1566_v9  ;;  %v434_v28 = vsub.f32 -1.0, %v1566_v9  ;;  %1026 = vlog2.f32 %v468_v54  ;;  %v481_v30 = vadd.f32 %v1009_v24, %v1007_v23 }
 0x157   :  { %v1017_v36 = vpop.eup %1016  ;;  %1028 = vpow2.f32 %v409_v32 }
 0x158   :  { %v1019_v62 = vpop.eup %1018  ;;  %1030 = vpow2.f32 %v457_v39  ;;  %v417_v45 = vmul.f32 1.442695, %v386_v52  ;;  %v465_v60 = vmul.f32 1.442695, %v434_v28  ;;  %v469_v32 = vadd.f32 %v1017_v36, %v1015_v20 }
 0x159   :  { %v1021_v55 = vpop.eup %1020  ;;  %v500_v10 = vmul.f32 0.6931472, %v1019_v62  ;;  %1032 = vlog2.f32 %v476_v43 }
 0x15a   :  { %v1023_v21 = vpop.eup %1022  ;;  %1034 = vpow2.f32 %v417_v45  ;;  %v322_v14 = vmul.f32 0.6931472, %v1021_v55 }
 0x15b   :  { %v1025_v40 = vpop.eup %1024  ;;  %1036 = vpow2.f32 %v465_v60  ;;  %v1578_v15 = vadd.f32 %v500_v10, %v1446_v53  ;;  %v492_v54 = vmul.f32 0.6931472, %v1023_v21 }
 0x15c   :  { %v1027_v7 = vpop.eup %1026  ;;  %v346_v61 = vadd.f32 %v322_v14, %v1435_v0  ;;  %v508_v5 = vmul.f32 0.6931472, %v1025_v40  ;;  %1038 = vlog2.f32 %v480_v46  ;;  %v473_v0 = vadd.f32 %v1005_v51, %v1547_v1 }
 0x15d   :  { %v1029_v33 = vpop.eup %1028  ;;  %v539_v18 = vsub.f32 %v1228_v38, %v1578_v15  ;;  %v1584_v39 = vadd.f32 %v492_v54, %v1466_v35  ;;  %v486_v31 = vmul.f32 0.6931472, %v1027_v7  ;;  %1040 = vlog2.f32 %v472_v47 }
 0x15e   :  { %v1031_v6 = vpop.eup %1030  ;;  %v1586_v53 = vmax.f32 %v346_v61, -1.0  ;;  %v1589_v23 = vadd.f32 %v508_v5, %v1459_v26  ;;  %1042 = vlog2.f32 %v477_v44 }
 0x15f   :  { %v1033_v24 = vpop.eup %1032  ;;  %871 = vmatmul.msk.f32.vlgmr.msra.gmra.mxu2 %vm162_vm8, %v539_v18  ;;  %v535_v38 = vsub.f32 %v1263_v50, %v1584_v39  ;;  %v1596_v35 = vadd.f32 %v486_v31, %v1495_v63  ;;  %1044 = vlog2.f32 %v481_v30  ;;  %v478_v43 = vadd.f32 %v1031_v6, %v1029_v33 }
 0x160   :  { %v1035_v20 = vpop.eup %1034  ;;  %v378_v52 = vsub.f32 %v346_v61, %v1586_v53  ;;  %v426_v26 = vsub.f32 -1.0, %v1586_v53  ;;  %v543_v28 = vsub.f32 %v1259_v49, %v1589_v23  ;;  %v502_v1 = vmul.f32 0.6931472, %v1033_v24 }
 0x161   :  { %v1037_v51 = vpop.eup %1036  ;;  %867 = vmatmul.msk.f32.vlgmr.msra.gmra.mxu1 %vm162_vm8, %v535_v38  ;;  %v532_v50 = vsub.f32 %v1289_v58, %v1596_v35  ;;  %1046 = vlog2.f32 %v469_v32  ;;  %v470_v63 = vadd.f32 %v1013_v41, %v1563_v17 }
 0x162   :  { %v1039_v36 = vpop.eup %1038  ;;  %v401_v62 = vmul.f32 1.442695, %v378_v52  ;;  %v449_v45 = vmul.f32 1.442695, %v426_v26  ;;  %875 = vmatmul.msk.f32.vlgmr.msra.gmra.mxu3 %vm162_vm8, %v543_v28  ;;  %v1608_v60 = vadd.f32 %v502_v1, %v1481_v19  ;;  %1048 = vlog2.f32 %v473_v0  ;;  %v1786_v26 = vld [vmem:[#allocation11_spill] sm:$0xff] }
 0x163   :  { %v1041_v49 = vpop.eup %1040  ;;  %864 = vmatmul.msk.f32.gmra.mxu0 %vm162_vm8, %v532_v50  ;;  %v510_v46 = vmul.f32 0.6931472, %v1039_v36  ;;  %1050 = vlog2.f32 %v478_v43  ;;  %v482_v55 = vadd.f32 %v1037_v51, %v1035_v20  ;;  %v567_v28 = vand.u32 1, %v1786_v26 }
 0x164   :  { %v1043_v10 = vpop.eup %1042  ;;  %1052 = vpow2.f32 %v401_v62  ;;  %v540_v58 = vsub.f32 %v1224_v37, %v1608_v60  ;;  %v494_v17 = vmul.f32 0.6931472, %v1041_v49  ;;  %vm727_vm11 = vcmp.le.s32.totalorder %v1786_v26, 1 }
 0x165   :  { %v1045_v41 = vpop.eup %1044  ;;  %1054 = vpow2.f32 %v449_v45  ;;  %v1614_v47 = vadd.f32 %v510_v46, %v1462_v34  ;;  %v504_v19 = vmul.f32 0.6931472, %v1043_v10  ;;  %vm1681_vm12 = vcmp.eq.s32.totalorder %v567_v28, 1 }
 0x166   :  { %v1617_v21 = vadd.f32 %v494_v17, %v1506_v16  ;;  %v512_v14 = vmul.f32 0.6931472, %v1045_v41  ;;  %1056 = vlog2.f32 %v470_v63  ;;  %v551_v63 = vsub.f32 -1.0, %v1584_v39 }
 0x167   :  { %v1047_v44 = vpop.eup %1046  ;;  %872 = vmatmul.msk.f32.gmra.mxu2 %vm162_vm8, %v540_v58  ;;  %1058 = vlog2.f32 %v482_v55  ;;  %v544_v37 = vsub.f32 %v1255_v48, %v1614_v47  ;;  %v1625_v7 = vadd.f32 %v504_v19, %v1491_v56  ;;  %v548_v45 = vsub.f32 -1.0, %v1596_v35 }
 0x168   :  { %v1049_v40 = vpop.eup %1048  ;;  %v536_v54 = vsub.f32 %v1293_v59, %v1617_v21  ;;  %v488_v30 = vmul.f32 0.6931472, %v1047_v44  ;;  %v1630_v5 = vadd.f32 %v512_v14, %v1523_v25  ;;  %v555_v49 = vsub.f32 -1.0, %v1578_v15 }
 0x169   :  { %v1051_v34 = vpop.eup %1050  ;;  %v496_v16 = vmul.f32 0.6931472, %v1049_v40  ;;  %v541_v0 = vsub.f32 %v1285_v57, %v1625_v7  ;;  %v559_v39 = vsub.f32 -1.0, %v1589_v23  ;;  %v552_v35 = vsub.f32 -1.0, %v1617_v21 }
 0x16a   :  { %v1053_v61 = vpop.eup %1052  ;;  %876 = vmatmul.msk.f32.gmra.mxu3 %vm162_vm8, %v544_v37  ;;  %868 = vmatmul.msk.f32.gmra.mxu1 %vm162_vm8, %v536_v54  ;;  %v1633_v32 = vadd.f32 %v488_v30, %v1538_v27  ;;  %v506_v33 = vmul.f32 0.6931472, %v1051_v34  ;;  %v545_v25 = vsub.f32 %v1316_v3, %v1630_v5  ;;  %v556_v19 = vsub.f32 -1.0, %v1608_v60 }
 0x16b   :  { %v1055_v48 = vpop.eup %1054  ;;  %v1638_v56 = vadd.f32 %v496_v16, %v1520_v22  ;;  %v560_v37 = vsub.f32 -1.0, %v1614_v47 }
 0x16c   :  { %v1057_v59 = vpop.eup %1056  ;;  %v533_v18 = vsub.f32 %v1320_v4, %v1633_v32  ;;  %v474_v31 = vadd.f32 %v1055_v48, %v1053_v61  ;;  %v1647_v4 = vadd.f32 %v506_v33, %v1554_v8  ;;  %v549_v44 = vsub.f32 -1.0, %v1633_v32 }
 0x16d   :  { %v1059_v6 = vpop.eup %1058  ;;  %v490_v24 = vmul.f32 0.6931472, %v1057_v59  ;;  %v537_v22 = vsub.f32 %v1312_v2, %v1638_v56  ;;  %v553_v60 = vsub.f32 -1.0, %v1638_v56  ;;  %v557_v61 = vsub.f32 -1.0, %v1625_v7 }
 0x16e   :  { %865 = vmatmul.msk.f32.gmra.mxu0 %vm162_vm8, %v533_v18  ;;  %1060 = vlog2.f32 %v474_v31  ;;  %v514_v27 = vmul.f32 0.6931472, %v1059_v6  ;;  %v542_v3 = vsub.f32 %v1343_v12, %v1647_v4  ;;  %v1785_v12 = vld [vmem:[#allocation12_spill] sm:$0xff]  ;;  %v561_v59 = vsub.f32 -1.0, %v1630_v5 }
 0x16f   :  { %873 = vmatmul.msk.f32.gmra.mxu2 %vm162_vm8, %v541_v0  ;;  %v1652_v38 = vadd.f32 %v490_v24, %v1529_v29  ;;  %v558_v0 = vsub.f32 -1.0, %v1647_v4 }
 0x170   :  { %v1657_v57 = vadd.f32 %v514_v27, %v1566_v9  ;;  %v1784_v9 = vld [vmem:[#allocation14_spill] sm:$0xff] }
 0x171   :  { %v534_v8 = vsub.f32 %v1339_v11, %v1652_v38  ;;  %v1675_v11 = vmul.u32 2, %v1785_v12  ;;  %v550_v47 = vsub.f32 -1.0, %v1652_v38 }
 0x172   :  { %877 = vmatmul.msk.f32.gmra.mxu3 %vm162_vm8, %v545_v25  ;;  %869 = vmatmul.msk.f32.gmra.mxu1 %vm162_vm8, %v537_v22  ;;  %v546_v2 = vsub.f32 %v1347_v13, %v1657_v57  ;;  %v562_v27 = vsub.f32 -1.0, %v1657_v57 }
 0x173   :  { %vm725_vm10 = vcmp.le.s32.totalorder %v1786_v26, %v1675_v11 }
 0x174   :  { %v1061_v43 = vpop.eup %1060  ;;  %vm730_vm13 = vmand %vm727_vm11, %vm725_vm10 }
 0x175   :  { %v498_v20 = vmul.f32 0.6931472, %v1061_v43 }
 0x176   :  { %866 = vmatmul.msk.f32.gmra.mxu0 %vm162_vm8, %v534_v8 }
 0x177   :  { %874 = vmatmul.msk.f32.gmra.mxu2 %vm162_vm8, %v542_v3  ;;  %v1668_v29 = vadd.f32 %v498_v20, %v1586_v53  ;;  %v547_v53 = vsub.f32 -1.0, %v1550_v42 }
 0x179   :  { %v538_v52 = vsub.f32 %v1784_v9, %v1668_v29  ;;  %v554_v7 = vsub.f32 -1.0, %v1668_v29 }
 0x17a   :  { %878 = vmatmul.msk.f32.gmra.mxu3 %vm162_vm8, %v546_v2 }
 0x17b   :  { %870 = vmatmul.msk.f32.gmra.mxu1 %vm162_vm8, %v538_v52 }
 0x1d1   :  { %v642_v1 = vpop.f32.mrf.mxu0 }
 0x1d2   :  { %v692_v51 = vsel %vm1681_vm12, %v642_v1, %v547_v53 }
 0x1d3   :  { %708 = vst [vmem:[#allocation2] sm:$0xff] %v692_v51  ;;  %v731_v50 = vsel %vm730_vm13, %v692_v51, -1e+30 }
 0x1d4   :  { %732 = vst [vmem:[#allocation3] sm:$0xff] %v731_v50 }
 0x1de   :  { %v654_v36 = vpop.f32.mrf.mxu1 }
 0x1df   :  { %v696_v62 = vsel %vm1681_vm12, %v654_v36, %v551_v63 }
 0x1e0   :  { %712 = vst [vmem:[#allocation2 + $0x20] sm:$0xff] %v696_v62  ;;  %v645_v42 = vpop.f32.mrf.mxu0 }
 0x1e1   :  { %v693_v46 = vsel %vm1681_vm12, %v645_v42, %v548_v45 }
 0x1e2   :  { %v666_v55 = vpop.f32.mrf.mxu2  ;;  %709 = vst [vmem:[#allocation2 + $0x8] sm:$0xff] %v693_v46 }
 0x1e3   :  { %v700_v10 = vsel %vm1681_vm12, %v666_v55, %v555_v49 }
 0x1e4   :  { %716 = vst [vmem:[#allocation2 + $0x40] sm:$0xff] %v700_v10 }
 0x1e5   :  { %v678_v58 = vpop.f32.mrf.mxu3 }
 0x1e6   :  { %v704_v17 = vsel %vm1681_vm12, %v678_v58, %v559_v39 }
 0x1e7   :  { %720 = vst [vmem:[#allocation2 + $0x60] sm:$0xff] %v704_v17  ;;  %v657_v41 = vpop.f32.mrf.mxu1 }
 0x1e8   :  { %v697_v15 = vsel %vm1681_vm12, %v657_v41, %v552_v35 }
 0x1e9   :  { %713 = vst [vmem:[#allocation2 + $0x28] sm:$0xff] %v697_v15 }
 0x1ea   :  { %v669_v14 = vpop.f32.mrf.mxu2 }
 0x1eb   :  { %v701_v23 = vsel %vm1681_vm12, %v669_v14, %v556_v19  ;;  %v648_v40 = vpop.f32.mrf.mxu0 }
 0x1ec   :  { %717 = vst [vmem:[#allocation2 + $0x48] sm:$0xff] %v701_v23  ;;  %v694_v21 = vsel %vm1681_vm12, %v648_v40, %v549_v44 }
 0x1ed   :  { %v681_v54 = vpop.f32.mrf.mxu3  ;;  %710 = vst [vmem:[#allocation2 + $0x10] sm:$0xff] %v694_v21 }
 0x1ee   :  { %v705_v30 = vsel %vm1681_vm12, %v681_v54, %v560_v37 }
 0x1ef   :  { %721 = vst [vmem:[#allocation2 + $0x68] sm:$0xff] %v705_v30  ;;  %v660_v34 = vpop.f32.mrf.mxu1 }
 0x1f0   :  { %v698_v16 = vsel %vm1681_vm12, %v660_v34, %v553_v60 }
 0x1f1   :  { %714 = vst [vmem:[#allocation2 + $0x30] sm:$0xff] %v698_v16 }
 0x1f2   :  { %v672_v32 = vpop.f32.mrf.mxu2 }
 0x1f3   :  { %v702_v48 = vsel %vm1681_vm12, %v672_v32, %v557_v61  ;;  %v651_v33 = vpop.f32.mrf.mxu0 }
 0x1f4   :  { %718 = vst [vmem:[#allocation2 + $0x50] sm:$0xff] %v702_v48  ;;  %v695_v18 = vsel %vm1681_vm12, %v651_v33, %v550_v47 }
 0x1f5   :  { %v684_v56 = vpop.f32.mrf.mxu3  ;;  %711 = vst [vmem:[#allocation2 + $0x18] sm:$0xff] %v695_v18 }
 0x1f6   :  { %v706_v31 = vsel %vm1681_vm12, %v684_v56, %v561_v59 }
 0x1f7   :  { %722 = vst [vmem:[#allocation2 + $0x70] sm:$0xff] %v706_v31 }
 0x1f8   :  { %v663_v6 = vpop.f32.mrf.mxu1 }
 0x1f9   :  { %v699_v24 = vsel %vm1681_vm12, %v663_v6, %v554_v7 }
 0x1fa   :  { %v675_v25 = vpop.f32.mrf.mxu2  ;;  %715 = vst [vmem:[#allocation2 + $0x38] sm:$0xff] %v699_v24 }
 0x1fb   :  { %v703_v5 = vsel %vm1681_vm12, %v675_v25, %v558_v0  ;;  %841 = sbr.rel (%p880_p2) target bundleno = 669 (0x29d), region = 30 }
 0x1fc   :  { %719 = vst [vmem:[#allocation2 + $0x58] sm:$0xff] %v703_v5 }
 0x1fd   :  { %v687_v22 = vpop.f32.mrf.mxu3 }
 0x1fe   :  { %v707_v38 = vsel %vm1681_vm12, %v687_v22, %v562_v27 }
 0x1ff   :  { %723 = vst [vmem:[#allocation2 + $0x78] sm:$0xff] %v707_v38 }
 0x200 LB: > { %v741_v4 = vld [vmem:[#allocation3] sm:$0xff]  ;;  %s1138_s18 = smov 1   ;;  %s1139_s19 = smov 2   ;;  %v1789_v3 = vld [vmem:[#allocation11_spill] sm:$0xff]  ;;  %s1134_s3 = sphi %s1738_s3, %s740_s3  }
 0x201   : > { %746 = vrot.lane.b32.xlu0 %v741_v4, %s1138_s18  ;;  %vm745_vm14 = vcmp.ge.s32.totalorder %v1789_v3, 1  ;;  %vm751_vm15 = vcmp.ge.s32.totalorder %v1789_v3, 2  ;;  %s881_s20 = sshll.u32 %s1134_s3, 3  ;;  %s740_s3 = sadd.s32 1, %s1134_s3   ;;  %v1790_v10 = vld [vmem:[#allocation13_spill] sm:$0xff] }
 0x202   : > { %vm752_vm0 = vmand %vm1681_vm12, %vm751_vm15  ;;  %s837_s21 = scalar_lea.vmem [#allocation2], %s881_s20  ;;  %v776_v42 = vstv %s740_s3  ;;  %p736_p3 = scmp.ge.s32.totalorder %s740_s3, %s879_s23 }
 0x203   : > { %vm777_vm1 = vcmp.lt.s32.totalorder %v776_v42, %v1790_v10 }
 0x206   : > { %v882_v62 = vld [vmem:[%s837_s21 + $0x8] sm:$0xff] }
 0x209   : > { %753 = vrot.lane.b32.xlu0 %v741_v4, %s1139_s19 }
 0x273   : > { %v747_v57 = vpop.permute.xlu0 %746 }
 0x274   : > { %v750_v43 = vsel %vm745_vm14, %v747_v57, -1e+30 }
 0x275   : > { %v758_v8 = vmax.f32 %v741_v4, %v750_v43 }
 0x27b   : > { %v754_v20 = vpop.permute.xlu0 %753 }
 0x27c   : > { %v757_v2 = vsel %vm752_vm0, %v754_v20, -1e+30 }
 0x27d   : > { %v759_v29 = vmax.f32 %v758_v8, %v757_v2 }
 0x27f   : > { %v760_v9 = vsub.f32 %v741_v4, %v759_v29  ;;  %v763_v52 = vsub.f32 %v750_v43, %v759_v29  ;;  %v767_v12 = vsub.f32 %v757_v2, %v759_v29  ;;  %v771_v49 = vadd.f32 %v882_v62, %v759_v29 }
 0x281   : > { %v761_v26 = vmul.f32 1.442695, %v760_v9  ;;  %v764_v28 = vmul.f32 1.442695, %v763_v52  ;;  %v768_v53 = vmul.f32 1.442695, %v767_v12 }
 0x283   : > { %1062 = vpow2.f32 %v761_v26 }
 0x284   : > { %1064 = vpow2.f32 %v764_v28 }
 0x285   : > { %1066 = vpow2.f32 %v768_v53 }
 0x289   : > { %v1063_v1 = vpop.eup %1062 }
 0x28a   : > { %v1065_v51 = vpop.eup %1064 }
 0x28b   : > { %v766_v50 = vadd.f32 %v1065_v51, %v1063_v1  ;;  %v1067_v63 = vpop.eup %1066 }
 0x28d   : > { %v770_v36 = vadd.f32 %v1067_v63, %v766_v50 }
 0x28f   : > { %1068 = vlog2.f32 %v770_v36 }
 0x295   : > { %v1069_v45 = vpop.eup %1068 }
 0x296   : > { %v773_v46 = vmul.f32 0.6931472, %v1069_v45 }
 0x298   : > { %v774_v55 = vadd.f32 %v773_v46, %v771_v49  ;;  %739 = sbr.rel (!%p736_p3) target bundleno = 512 (0x200), region = 36 }
 0x29a   : > { %v775_v39 = vsel %vm725_vm10, %v774_v55, -1e+30 }
 0x29b   : > { %v780_v58 = vsel %vm777_vm1, %v775_v39, %v741_v4 }
 0x29c   : > { %781 = vst [vmem:[#allocation3] sm:$0xff] %v780_v58 }
 0x29d PF:  { %v1791_v17 = vld [vmem:[#allocation11_spill] sm:$0xff]  ;;  %v883_v35 = vadd.s32 4294967295, %v1675_v11  ;;  %v1792_v40 = vld [vmem:[#allocation12_spill] sm:$0xff]  ;;  %s1140_s24 = smov [#allocation7]   ;;  %s827_s26 = sshll.u32 %s1769_s4, 4  ;;  %s828_s26 = int_to_ptr.hbm [resolvable:$true] %s827_s26 }
 0x29e   :  { %vm783_vm2 = vcmp.eq.s32.totalorder %v1791_v17, %v1675_v11  ;;  %vm798_vm5 = vcmp.gt.s32.totalorder %v1792_v40, 1  ;;  %s825_s22 = sshll.u32 %s1140_s24, 4  ;;  %s826_s22 = int_to_ptr.vmem [resolvable:$true] %s825_s22 }
 0x29f   :  { %vm785_vm3 = vcmp.eq.s32.totalorder %v1791_v17, %v883_v35  ;;  %v799_v13 = vsel %vm798_vm5, %v1792_v40, 1 }
 0x2a0   :  { %vm786_vm4 = vmor %vm783_vm2, %vm785_vm3  ;;  %v800_v37 = vcvt.s32.f32 %v799_v13 }
 0x2a2   :  { %vm808_vm6 = vweird.f32 %v800_v37  ;;  %v814_v34 = vand.u32 2147483648, %v800_v37  ;;  %v812_v61 = vand.u32 2147483647, %v800_v37 }
 0x2a3   :  { %v782_v41 = vld [vmem:[#allocation3] sm:$0xff] }
 0x2a4   :  { %v787_v15 = vsel %vm786_vm4, %v782_v41, -1e+30  ;;  %v815_v47 = vor.u32 1.1754944e-38, %v814_v34  ;;  %vm813_vm9 = vcmp.eq.f32.partialorder %v812_v61, 8.507059e+37 }
 0x2a5   :  { %788 = vmax.xlane.f32.xlu0 %v787_v15 }
 0x318   :  { %v789_v19 = vpop.xlane.xlu0 %788 }
 0x319   :  { %v790_v14 = vsub.f32 %v787_v15, %v789_v19 }
 0x31b   :  { %v791_v44 = vmul.f32 1.442695, %v790_v14 }
 0x31d   :  { %1070 = vpow2.f32 %v791_v44 }
 0x31e   :  { %1072 = vrcp.f32 %v800_v37 }
 0x323   :  { %v1071_v23 = vpop.eup %1070 }
 0x324   :  { %793 = vadd.xlane.f32.xlu0 %v1071_v23  ;;  %v1073_v21 = vpop.eup %1072 }
 0x325   :  { %v804_v11 = vmul.f32 %v1073_v21, %v800_v37  ;;  %vm809_vm7 = vweird.f32 %v1073_v21 }
 0x326   :  { %vm810_vm8 = vmor %vm808_vm6, %vm809_vm7 }
 0x327   :  { %v805_v54 = vsub.f32 1.0, %v804_v11 }
 0x329   :  { %v806_v60 = vmul.f32 %v1073_v21, %v805_v54 }
 0x32b   :  { %v807_v16 = vadd.f32 %v1073_v21, %v806_v60 }
 0x32d   :  { %v811_v33 = vsel %vm810_vm8, %v1073_v21, %v807_v16 }
 0x32e   :  { %v816_v18 = vsel %vm813_vm9, %v815_v47, %v811_v33 }
 0x397   :  { %v794_v30 = vpop.xlane.xlu0 %793 }
 0x398   :  { %1074 = vlog2.f32 %v794_v30 }
 0x39e   :  { %v1075_v32 = vpop.eup %1074 }
 0x39f   :  { %v796_v48 = vmul.f32 0.6931472, %v1075_v32 }
 0x3a1   :  { %v797_v59 = vadd.f32 %v796_v48, %v789_v19 }
 0x3a3   :  { %v802_v56 = vsub.f32 0.0, %v797_v59  ;;  %vm801_vm10 = vcmp.lt.f32.partialorder %v797_v59, -1e+25 }
 0x3a5   :  { %v817_v31 = vmul.f32 %v816_v18, %v802_v56 }
 0x3a7   :  { %v818_v7 = vsel %vm801_vm10, 0.0, %v817_v31 }
 0x3a8   :  { %819 = vst [vmem:[#allocation7] sm:$0xff] %v818_v7 }
 0x3a9   :  { %830 = dma.vmem_to_hbm [thread:$0]  %s826_s22, 128, %s828_s26, [#allocation8]  }
 0x3aa   :  { %1130 = dma.done.wait [#allocation8], 128  }
 0x3ab   :  { %1131 = vsyncadd [#allocation8], 4294967168 }
 0x3ac   :  { %835 = vsyncpa [#allocation8], 1 }

</bundles_post_ra>
